<compile_context>
chip_gen: v6e
topology: v6e:2x2x1
jax: 0.10.0
libtpu: 0.0.40
codegen_flags: <defaults>
</compile_context>

<pallas_src>
import jax
import jax.numpy as jnp
from jax import lax
from jax.experimental import pallas as pl
from jax.experimental.pallas import tpu as pltpu

LEAKY_SLOPE = 0.01   # nn.LeakyReLU default
L1_EPS = 1e-12       # F.normalize default eps
BN_EPS = 1e-5        # nn.BatchNorm2d default eps


# --------------------------------------------------------------------------
# Kernel
# --------------------------------------------------------------------------
def _point_update_kernel(bd_ref, node_ref, w1a_ref, w1b_ref, b1_ref,
                         w2_ref, b2_ref, out_ref):
    # One grid step == one block-diagonal slab of bblk batch elements.
    # bd_ref:   (R, R)  block-diagonal edge slab, R = bblk * N
    # node_ref: (R, D)  stacked point features
    # out_ref:  (R, out_c)
    R = bd_ref.shape[0]

    bd = bd_ref[...]
    # In block-diagonal layout the per-batch diagonal IS the global diagonal:
    # a single r == c select implements the 1 - eye(N) mask for every batch.
    r = lax.broadcasted_iota(jnp.int32, (R, R), 0)
    c = lax.broadcasted_iota(jnp.int32, (R, R), 1)
    masked = jnp.where(r == c, 0.0, bd)

    # F.normalize(p=1, dim=-1) denominator (off-block entries are exact zeros).
    denom = jnp.sum(jnp.abs(masked), axis=-1, keepdims=True)          # (R, 1)
    inv = pl.reciprocal(jnp.maximum(denom, L1_EPS), approx=False)     # exact

    node = node_ref[...]                                              # (R, D)
    # Block-diagonal matmul == stacked per-batch bmm; the diagonal row scaling
    # (1/denom) commutes through the matmul, so scale the (R, D) result.
    aggr = jnp.dot(masked, node, preferred_element_type=jnp.float32) * inv

    # concat([node, aggr], -1) @ (W1^T * s1)  ==  node @ W1a + aggr @ W1b
    h = (jnp.dot(node, w1a_ref[...], preferred_element_type=jnp.float32)
         + jnp.dot(aggr, w1b_ref[...], preferred_element_type=jnp.float32)
         + b1_ref[...])                                               # folded BN1
    h = jnp.maximum(h, LEAKY_SLOPE * h)                               # LeakyReLU

    o = jnp.dot(h, w2_ref[...], preferred_element_type=jnp.float32) + b2_ref[...]
    o = jnp.maximum(o, LEAKY_SLOPE * o)                               # LeakyReLU

    out_ref[...] = o.astype(out_ref.dtype)


# --------------------------------------------------------------------------
# Generation-aware blocking
# --------------------------------------------------------------------------
def _num_tensorcores():
    """TensorCores sharing the grid on one chip (v7x megacore).  Defensive."""
    try:
        info = pltpu.get_tpu_info()
        for name in ("num_tensorcores", "tensorcores_per_chip", "num_cores",
                     "cores_per_chip", "core_count"):
            v = getattr(info, name, None)
            if isinstance(v, int) and v >= 1:
                return v
    except Exception:
        pass
    return 1


def _vmem_capacity_bytes():
    try:
        info = pltpu.get_tpu_info()
        for name in ("vmem_capacity_bytes", "vmem_size_bytes", "vmem_bytes"):
            v = getattr(info, name, None)
            if isinstance(v, int) and v > 0:
                return v
    except Exception:
        pass
    return 64 * 1024 * 1024   # v7x per-TC physical: smallest of the three gens


def _step_block_bytes(bblk, N, D, out_c):
    """Double-buffered per-step block footprint (f32)."""
    R = bblk * N
    return 2 * 4 * (R * R + R * D + R * out_c)


def _choose_blocking(B, N, D, out_c, num_tc, vmem_cap):
    """Pick (bblk, steps).  grid=(1,) on single-TC chips; one step per TC
    otherwise, but only if each step still stacks >= 128 MLP rows."""
    budget = max(vmem_cap // 4, 4 << 20)
    r_cap = 512                                # cap the block-diagonal LHS size

    steps = 1
    if num_tc > 1 and B >= num_tc and pl.cdiv(B, num_tc) * N >= 128:
        steps = num_tc

    bblk = pl.cdiv(B, steps)
    bblk = min(bblk, max(1, r_cap // N))
    while bblk > 1 and _step_block_bytes(bblk, N, D, out_c) > budget:
        bblk = max(1, bblk // 2)

    steps = pl.cdiv(B, bblk)
    if (bblk * N) % 8 != 0 and steps > 1:
        # Keep blocks (8, .)-tile aligned; fall back to one full-array step.
        bblk, steps = B, 1
    return bblk, steps


def _block_diagonalize(edge, bblk):
    """(S*bblk, N, N) -> (S*bblk*N, bblk*N): per-step block-diagonal slabs,
    flattened along rows.  Pure layout transform (plain XLA) in the wrapper."""
    Bp, N, _ = edge.shape
    S = Bp // bblk
    e = edge.reshape(S, bblk, N, 1, N)
    eye = jnp.eye(bblk, dtype=edge.dtype).reshape(1, bblk, 1, bblk, 1)
    return (e * eye).reshape(S * bblk * N, bblk * N)


# --------------------------------------------------------------------------
# Wrapper
# --------------------------------------------------------------------------
def point_update(distribution_edge, point_node, params):
    """distribution_edge: (B, N, N) f32; point_node: (B, N, D) f32."""
    w1a, w1b, b1, w2, b2 = params
    B, N, D = point_node.shape
    hidden = w1a.shape[1]
    out_c = w2.shape[1]
    assert w1a.shape[0] == D and w1b.shape[0] == D

    num_tc = _num_tensorcores()
    vmem_cap = _vmem_capacity_bytes()
    bblk, steps = _choose_blocking(B, N, D, out_c, num_tc, vmem_cap)

    # Pad awkward B up to bblk * steps (padded rows are discarded at the end).
    Bp = bblk * steps
    if Bp != B:
        pad = Bp - B
        distribution_edge = jnp.pad(distribution_edge, ((0, pad), (0, 0), (0, 0)))
        point_node = jnp.pad(point_node, ((0, pad), (0, 0), (0, 0)))

    R = bblk * N
    bd = _block_diagonalize(distribution_edge, bblk)      # (steps*R, R)
    node2 = point_node.reshape(Bp * N, D)                 # (steps*R, D)

    # Only raise the scoped-VMEM limit when the estimated footprint actually
    # needs it (weights + biases + double-buffered blocks).
    weight_bytes = 4 * (2 * D * hidden + hidden * out_c + hidden + out_c)
    est_bytes = _step_block_bytes(bblk, N, D, out_c) + 2 * weight_bytes
    cp_kwargs = dict(dimension_semantics=("parallel",))
    if est_bytes > (12 << 20):
        cp_kwargs["vmem_limit_bytes"] = int(min(vmem_cap // 2,
                                                est_bytes + (4 << 20)))

    out2 = pl.pallas_call(
        _point_update_kernel,
        out_shape=jax.ShapeDtypeStruct((Bp * N, out_c), jnp.float32),
        grid=(steps,),
        in_specs=[
            pl.BlockSpec((R, R), lambda i: (i, 0)),        # block-diag edge slab
            pl.BlockSpec((R, D), lambda i: (i, 0)),        # stacked point features
            pl.BlockSpec((D, hidden), lambda i: (0, 0)),   # W1 (node half, BN1-folded)
            pl.BlockSpec((D, hidden), lambda i: (0, 0)),   # W1 (aggr half, BN1-folded)
            pl.BlockSpec((1, hidden), lambda i: (0, 0)),   # folded BN1 bias
            pl.BlockSpec((hidden, out_c), lambda i: (0, 0)),  # W2 (BN2-folded)
            pl.BlockSpec((1, out_c), lambda i: (0, 0)),    # folded BN2 bias
        ],
        out_specs=pl.BlockSpec((R, out_c), lambda i: (i, 0)),
        compiler_params=pltpu.CompilerParams(**cp_kwargs),
    )(bd, node2, w1a, w1b, b1, w2, b2)

    return out2.reshape(Bp, N, out_c)[:B]


# --------------------------------------------------------------------------
# Params & reference
# --------------------------------------------------------------------------
def make_params(key, in_c, base_c):
    """Synthetic params matching the PyTorch module's shapes.

    BN eval-mode scales are folded into the (transposed) conv weights and W1
    is pre-split into its node / aggregation halves, so only bias adds remain
    in-kernel and no in-kernel weight slicing is needed.
    """
    hidden = 2 * base_c
    d = in_c // 2
    k = jax.random.split(key, 8)
    # Conv2d weights (out, in, 1, 1) -> dense (out, in)
    w1 = jax.random.normal(k[0], (hidden, in_c), jnp.float32) * (1.0 / jnp.sqrt(in_c))
    w2 = jax.random.normal(k[1], (base_c, hidden), jnp.float32) * (1.0 / jnp.sqrt(hidden))
    # BatchNorm2d params + running stats (eval mode)
    g1 = 1.0 + 0.1 * jax.random.normal(k[2], (hidden,), jnp.float32)
    be1 = 0.1 * jax.random.normal(k[3], (hidden,), jnp.float32)
    m1 = 0.1 * jax.random.normal(k[4], (hidden,), jnp.float32)
    v1 = jnp.abs(1.0 + 0.1 * jax.random.normal(k[5], (hidden,), jnp.float32))
    g2 = 1.0 + 0.1 * jax.random.normal(k[6], (base_c,), jnp.float32)
    be2 = 0.1 * jax.random.normal(k[7], (base_c,), jnp.float32)
    m2 = jnp.zeros((base_c,), jnp.float32)
    v2 = jnp.ones((base_c,), jnp.float32)

    s1 = g1 / jnp.sqrt(v1 + BN_EPS)
    b1 = be1 - m1 * s1
    s2 = g2 / jnp.sqrt(v2 + BN_EPS)
    b2 = be2 - m2 * s2

    w1t_s = w1.T * s1[None, :]          # (in_c, hidden), BN1 scale folded
    w2t_s = w2.T * s2[None, :]          # (hidden, base_c), BN2 scale folded
    return (w1t_s[:d], w1t_s[d:], b1.reshape(1, hidden),
            w2t_s, b2.reshape(1, base_c))


def reference(edge, node, params):
    """Pure-JAX reference (same folded params), full-precision matmuls."""
    w1a, w1b, b1, w2, b2 = params
    B, N, D = node.shape
    hp = jax.lax.Precision.HIGHEST
    mask = 1.0 - jnp.eye(N, dtype=edge.dtype)
    masked = edge * mask
    denom = jnp.maximum(jnp.sum(jnp.abs(masked), -1, keepdims=True), L1_EPS)
    ef = masked / denom
    aggr = jnp.einsum('bij,bjd->bid', ef, node, precision=hp)
    feat = jnp.concatenate([node, aggr], -1)
    w1 = jnp.concatenate([w1a, w1b], 0)                  # (2D, hidden)
    h = jnp.einsum('bnc,ch->bnh', feat, w1, precision=hp) + b1
    h = jnp.where(h > 0, h, LEAKY_SLOPE * h)
    o = jnp.einsum('bnh,ho->bno', h, w2, precision=hp) + b2
    o = jnp.where(o > 0, o, LEAKY_SLOPE * o)
    return o


if __name__ == "__main__":
    # meta_batch, num_sample, point feature dim — in_c must equal 2*D.
    B, N, D = 32, 8, 32
    in_c, base_c = 2 * D, 32

    key = jax.random.PRNGKey(0)
    k_edge, k_node, k_par = jax.random.split(key, 3)
    distribution_edge = jax.nn.softplus(
        jax.random.normal(k_edge, (B, N, N), jnp.float32))
    point_node = jax.random.normal(k_node, (B, N, D), jnp.float32)
    params = make_params(k_par, in_c, base_c)

    out = point_update(distribution_edge, point_node, params)
    out = jax.block_until_ready(out)

    ref = reference(distribution_edge, point_node, params)
    assert out.shape == (B, N, base_c)
    assert jnp.allclose(out, ref, atol=1e-4, rtol=1e-4), "mismatch vs reference"
    print("KERNEL_OK")
</pallas_src>

<mosaic_0001>
module attributes {stable_mosaic.version = 11 : i64} {
  func.func @_point_update_kernel(%arg0: i32, %arg1: memref<256x256xf32, #tpu.memory_space<vmem>>, %arg2: memref<256x32xf32, #tpu.memory_space<vmem>>, %arg3: memref<32x64xf32, #tpu.memory_space<vmem>>, %arg4: memref<32x64xf32, #tpu.memory_space<vmem>>, %arg5: memref<1x64xf32, #tpu.memory_space<vmem>>, %arg6: memref<64x32xf32, #tpu.memory_space<vmem>>, %arg7: memref<1x32xf32, #tpu.memory_space<vmem>>, %arg8: memref<256x32xf32, #tpu.memory_space<vmem>>) attributes {dimension_semantics = [#tpu.dimension_semantics<parallel>], iteration_bounds = array<i64: 1>, scalar_prefetch = 0 : i64, scratch_operands = 0 : i64, tpu.core_type = #tpu.core_type<tc>, window_params = [{transform_indices = @transform_0, window_bounds = array<i64: 256, 256>}, {transform_indices = @transform_1, window_bounds = array<i64: 256, 32>}, {pipeline_mode = #tpu.pipeline_mode<synchronous>, transform_indices = @transform_2, window_bounds = array<i64: 32, 64>}, {pipeline_mode = #tpu.pipeline_mode<synchronous>, transform_indices = @transform_3, window_bounds = array<i64: 32, 64>}, {pipeline_mode = #tpu.pipeline_mode<synchronous>, transform_indices = @transform_4, window_bounds = array<i64: 1, 64>}, {pipeline_mode = #tpu.pipeline_mode<synchronous>, transform_indices = @transform_5, window_bounds = array<i64: 64, 32>}, {pipeline_mode = #tpu.pipeline_mode<synchronous>, transform_indices = @transform_6, window_bounds = array<i64: 1, 32>}, {transform_indices = @transform_7, window_bounds = array<i64: 256, 32>}]} {
    %c0 = arith.constant 0 : index
    %c0_0 = arith.constant 0 : index
    %0 = vector.load %arg1[%c0, %c0_0] : memref<256x256xf32, #tpu.memory_space<vmem>>, vector<256x256xf32>
    %1 = tpu.iota {dimensions = array<i32: 0>} : vector<256x256xi32>
    %2 = tpu.iota {dimensions = array<i32: 1>} : vector<256x256xi32>
    %3 = arith.cmpi eq, %1, %2 : vector<256x256xi32>
    %cst = arith.constant 0.000000e+00 : f32
    %4 = vector.broadcast %cst : f32 to vector<256x256xf32>
    %5 = arith.select %3, %4, %0 : vector<256x256xi1>, vector<256x256xf32>
    %6 = math.absf %5 : vector<256x256xf32>
    %cst_1 = arith.constant dense<0.000000e+00> : vector<256xf32>
    %7 = vector.multi_reduction <add>, %6, %cst_1 [1] : vector<256x256xf32> to vector<256xf32>
    %8 = vector.shape_cast %7 : vector<256xf32> to vector<256x1xf32>
    %cst_2 = arith.constant 9.99999996E-13 : f32
    %9 = vector.broadcast %cst_2 : f32 to vector<256x1xf32>
    %10 = arith.maximumf %8, %9 : vector<256x1xf32>
    %11 = tpu.reciprocal %10 : vector<256x1xf32> -> vector<256x1xf32>
    %c0_3 = arith.constant 0 : index
    %c0_4 = arith.constant 0 : index
    %12 = vector.load %arg2[%c0_3, %c0_4] : memref<256x32xf32, #tpu.memory_space<vmem>>, vector<256x32xf32>
    %cst_5 = arith.constant dense<0.000000e+00> : vector<256x32xf32>
    %13 = tpu.matmul %5, %12, %cst_5 {dimension_numbers = #tpu.dot_dimension_numbers<[1], [0], [0], [1], [0, 0, 1, 1], [], []>} : vector<256x256xf32>, vector<256x32xf32>, vector<256x32xf32> -> vector<256x32xf32>
    %14 = vector.broadcast %11 : vector<256x1xf32> to vector<256x32xf32>
    %15 = arith.mulf %13, %14 : vector<256x32xf32>
    %c0_6 = arith.constant 0 : index
    %c0_7 = arith.constant 0 : index
    %16 = vector.load %arg3[%c0_6, %c0_7] : memref<32x64xf32, #tpu.memory_space<vmem>>, vector<32x64xf32>
    %cst_8 = arith.constant dense<0.000000e+00> : vector<256x64xf32>
    %17 = tpu.matmul %12, %16, %cst_8 {dimension_numbers = #tpu.dot_dimension_numbers<[1], [0], [0], [1], [0, 0, 1, 1], [], []>} : vector<256x32xf32>, vector<32x64xf32>, vector<256x64xf32> -> vector<256x64xf32>
    %c0_9 = arith.constant 0 : index
    %c0_10 = arith.constant 0 : index
    %18 = vector.load %arg4[%c0_9, %c0_10] : memref<32x64xf32, #tpu.memory_space<vmem>>, vector<32x64xf32>
    %cst_11 = arith.constant dense<0.000000e+00> : vector<256x64xf32>
    %19 = tpu.matmul %15, %18, %cst_11 {dimension_numbers = #tpu.dot_dimension_numbers<[1], [0], [0], [1], [0, 0, 1, 1], [], []>} : vector<256x32xf32>, vector<32x64xf32>, vector<256x64xf32> -> vector<256x64xf32>
    %20 = arith.addf %17, %19 : vector<256x64xf32>
    %c0_12 = arith.constant 0 : index
    %c0_13 = arith.constant 0 : index
    %21 = vector.load %arg5[%c0_12, %c0_13] : memref<1x64xf32, #tpu.memory_space<vmem>>, vector<1x64xf32>
    %22 = vector.broadcast %21 : vector<1x64xf32> to vector<256x64xf32>
    %23 = arith.addf %20, %22 : vector<256x64xf32>
    %cst_14 = arith.constant 0.00999999977 : f32
    %24 = vector.broadcast %cst_14 : f32 to vector<256x64xf32>
    %25 = arith.mulf %24, %23 : vector<256x64xf32>
    %26 = arith.maximumf %23, %25 : vector<256x64xf32>
    %c0_15 = arith.constant 0 : index
    %c0_16 = arith.constant 0 : index
    %27 = vector.load %arg6[%c0_15, %c0_16] : memref<64x32xf32, #tpu.memory_space<vmem>>, vector<64x32xf32>
    %cst_17 = arith.constant dense<0.000000e+00> : vector<256x32xf32>
    %28 = tpu.matmul %26, %27, %cst_17 {dimension_numbers = #tpu.dot_dimension_numbers<[1], [0], [0], [1], [0, 0, 1, 1], [], []>} : vector<256x64xf32>, vector<64x32xf32>, vector<256x32xf32> -> vector<256x32xf32>
    %c0_18 = arith.constant 0 : index
    %c0_19 = arith.constant 0 : index
    %29 = vector.load %arg7[%c0_18, %c0_19] : memref<1x32xf32, #tpu.memory_space<vmem>>, vector<1x32xf32>
    %30 = vector.broadcast %29 : vector<1x32xf32> to vector<256x32xf32>
    %31 = arith.addf %28, %30 : vector<256x32xf32>
    %cst_20 = arith.constant 0.00999999977 : f32
    %32 = vector.broadcast %cst_20 : f32 to vector<256x32xf32>
    %33 = arith.mulf %32, %31 : vector<256x32xf32>
    %34 = arith.maximumf %31, %33 : vector<256x32xf32>
    %c0_21 = arith.constant 0 : index
    %c0_22 = arith.constant 0 : index
    %35 = vector.load %arg8[%c0_21, %c0_22] : memref<256x32xf32, #tpu.memory_space<vmem>>, vector<256x32xf32>
    tpu.vector_store %arg8[%c0_21, %c0_22], %34 {strides = array<i32>} : memref<256x32xf32, #tpu.memory_space<vmem>>, vector<256x32xf32>,
    return
  }
  func.func @transform_0(%arg0: i32) -> (i32, i32) {
    %c0_i32 = arith.constant 0 : i32
    %c0_i32_0 = arith.constant 0 : i32
    return %arg0, %c0_i32 : i32, i32
  }
  func.func @transform_1(%arg0: i32) -> (i32, i32) {
    %c0_i32 = arith.constant 0 : i32
    %c0_i32_0 = arith.constant 0 : i32
    return %arg0, %c0_i32 : i32, i32
  }
  func.func @transform_2(%arg0: i32) -> (i32, i32) {
    %c0_i32 = arith.constant 0 : i32
    %c0_i32_0 = arith.constant 0 : i32
    %c0_i32_1 = arith.constant 0 : i32
    return %c0_i32, %c0_i32_0 : i32, i32
  }
  func.func @transform_3(%arg0: i32) -> (i32, i32) {
    %c0_i32 = arith.constant 0 : i32
    %c0_i32_0 = arith.constant 0 : i32
    %c0_i32_1 = arith.constant 0 : i32
    return %c0_i32, %c0_i32_0 : i32, i32
  }
  func.func @transform_4(%arg0: i32) -> (i32, i32) {
    %c0_i32 = arith.constant 0 : i32
    %c0_i32_0 = arith.constant 0 : i32
    %c0_i32_1 = arith.constant 0 : i32
    return %c0_i32, %c0_i32_0 : i32, i32
  }
  func.func @transform_5(%arg0: i32) -> (i32, i32) {
    %c0_i32 = arith.constant 0 : i32
    %c0_i32_0 = arith.constant 0 : i32
    %c0_i32_1 = arith.constant 0 : i32
    return %c0_i32, %c0_i32_0 : i32, i32
  }
  func.func @transform_6(%arg0: i32) -> (i32, i32) {
    %c0_i32 = arith.constant 0 : i32
    %c0_i32_0 = arith.constant 0 : i32
    %c0_i32_1 = arith.constant 0 : i32
    return %c0_i32, %c0_i32_0 : i32, i32
  }
  func.func @transform_7(%arg0: i32) -> (i32, i32) {
    %c0_i32 = arith.constant 0 : i32
    %c0_i32_0 = arith.constant 0 : i32
    return %arg0, %c0_i32 : i32, i32
  }
}

</mosaic_0001>

<bundles_post_ra>
// kernel: tpu_custom_call.1
= control target key start
LH: loop header
LB: loop body
LE: loop exit
PB: predicated region body
PF: predicated region fallthrough
CT: control target
= control target key end

     0   :  { %12 = vsyncpa [#allocation3], 0  ;;  %s2548_s24 = smov [#allocation2]   ;;  %s3936_s0 = inlined_call_operand.hbm [shape: f32[256,256], index: 0, kind: input, shape index: {}]   ;;  %s3937_s1 = inlined_call_operand.vmem [shape: f32[256,32], index: 1, kind: input, shape index: {}]   ;;  %s3938_s2 = inlined_call_operand.vmem [shape: f32[32,64], index: 2, kind: input, shape index: {}]   ;;  %s3939_s3 = inlined_call_operand.vmem [shape: f32[32,64], index: 3, kind: input, shape index: {}]   ;;  %s3940_s4 = inlined_call_operand.vmem [shape: f32[1,64], index: 4, kind: input, shape index: {}]   ;;  %s3941_s5 = inlined_call_operand.vmem [shape: f32[64,32], index: 5, kind: input, shape index: {}]   ;;  %s3942_s6 = inlined_call_operand.vmem [shape: f32[1,32], index: 6, kind: input, shape index: {}]   ;;  %s3943_s7 = inlined_call_operand.vmem [shape: f32[256,32], index: 7, kind: output, shape index: {}]  }
   0x1   :  { %s18_s25 = sshll.u32 %s2548_s24, 4  ;;  %s19_s25 = int_to_ptr.vmem [resolvable:$true] %s18_s25 }
   0x2   :  { %s2534_s26 = scalar_lea.vmem %s19_s25, 8192  ;;  %p2539_p1 = scmp.lt.s32.totalorder %s19_s25, %s19_s25 }
   0x3   :  { %p2535_p0 = scmp.ne.s32.totalorder %s19_s25, %s2534_s26  ;;  %p2540_p2 = scmp.lt.s32.totalorder %s2534_s26, %s2534_s26 }
   0x5   :  { %p2541_p3 = por %p2540_p2, %p2539_p1 }
   0x7   :  { %p2542_p4 = pnand %p2541_p3, %p2535_p0 }
   0x9   :  { %2545 = shalt.err (!%p2542_p4)
}
   0xa   :  { %s2549_s27 = smov 256   ;;  %s2550_s28 = smov 16  }
   0xb   :  { %24 = dma.hbm_to_vmem [thread:$0]  %s3936_s0, 8192, %s19_s25, [#allocation3], %s2549_s27, %s2549_s27, %s2550_s28  }
   0xc   :  { %2546 = dma.done.wait [#allocation3], 8192  }
   0xd   :  { %2547 = vsyncadd [#allocation3], 4294959104  ;;  %v104_v0 = vlaneseq  ;;  %v3944_v1 = vmov 0.0   ;;  %v507_v3 = vld [vmem:[%s3937_s1 + $0x78] sm:$0xff]  ;;  %v506_v4 = vld [vmem:[%s3937_s1 + $0x70] sm:$0xff] }
   0xe   :  { %524 = vmatprep.subr.mxu0 %v3944_v1  ;;  %v505_v7 = vld [vmem:[%s3937_s1 + $0x68] sm:$0xff]  ;;  %v504_v10 = vld [vmem:[%s3937_s1 + $0x60] sm:$0xff]  ;;  %v503_v13 = vld [vmem:[%s3937_s1 + $0x58] sm:$0xff] }
   0xf   :  { %v2596_v2 = vshrl.u32 %v104_v0, 7  ;;  %525 = vmatpush1.msra.mxu0 %v507_v3  ;;  %v2607_v6 = vand.u32 127, %v104_v0  ;;  %v2640_v15 = vld [vmem:[#allocation2 + $0x20] sm:$0xff]  ;;  %v2642_v16 = vld [vmem:[#allocation2 + $0x28] sm:$0xff]  ;;  %v502_v18 = vld [vmem:[%s3937_s1 + $0x50] sm:$0xff] }
  0x10   :  { %526 = vmatprep.subr.mxu0 %v3944_v1  ;;  %v273_v20 = vand.u32 2147483647, %v2642_v16  ;;  %v2658_v21 = vld [vmem:[#allocation2 + $0x40] sm:$0xff]  ;;  %v2663_v24 = vld [vmem:[#allocation2 + $0x48] sm:$0xff]  ;;  %v2669_v26 = vld [vmem:[#allocation2 + $0x30] sm:$0xff] }
  0x11   :  { %v2605_v5 = vadd.s32 16, %v2596_v2  ;;  %v2614_v8 = vadd.s32 32, %v2596_v2  ;;  %527 = vmatpush1.msra.mxu0 %v506_v4  ;;  %v2617_v9 = vadd.s32 24, %v2596_v2  ;;  %v2626_v11 = vadd.s32 40, %v2596_v2  ;;  %v2671_v27 = vld [vmem:[#allocation2 + $0x38] sm:$0xff]  ;;  %v501_v28 = vld [vmem:[%s3937_s1 + $0x48] sm:$0xff] }
  0x12   :  { %528 = vmatprep.subr.mxu0 %v3944_v1  ;;  %v2629_v12 = vadd.s32 48, %v2596_v2  ;;  %v2638_v14 = vadd.s32 56, %v2596_v2  ;;  %v2647_v17 = vadd.s32 64, %v2596_v2  ;;  %v2661_v22 = vadd.s32 72, %v2596_v2  ;;  %v500_v32 = vld [vmem:[%s3937_s1 + $0x40] sm:$0xff]  ;;  %v2692_v36 = vld [vmem:[#allocation2 + $0x50] sm:$0xff] }
  0x13   :  { %529 = vmatpush1.msra.mxu0 %v505_v7  ;;  %vm144_vm0 = vcmp.eq.s32.totalorder %v2605_v5, %v2607_v6  ;;  %vm148_vm1 = vcmp.eq.s32.totalorder %v2614_v8, %v2607_v6  ;;  %vm146_vm2 = vcmp.eq.s32.totalorder %v2617_v9, %v2607_v6  ;;  %vm150_vm3 = vcmp.eq.s32.totalorder %v2626_v11, %v2607_v6  ;;  %v2697_v38 = vld [vmem:[#allocation2 + $0x58] sm:$0xff]  ;;  %v2703_v40 = vld [vmem:[#allocation2 + $0x60] sm:$0xff]  ;;  %v2705_v41 = vld [vmem:[#allocation2 + $0x68] sm:$0xff] }
  0x14   :  { %530 = vmatprep.subr.mxu0 %v3944_v1  ;;  %v208_v19 = vsel %vm144_vm0, 0.0, %v2640_v15  ;;  %v212_v25 = vsel %vm148_vm1, 0.0, %v2658_v21  ;;  %vm152_vm4 = vcmp.eq.s32.totalorder %v2629_v12, %v2607_v6  ;;  %v277_v30 = vand.u32 2147483647, %v2663_v24  ;;  %v499_v48 = vld [vmem:[%s3937_s1 + $0x38] sm:$0xff]  ;;  %v2723_v51 = vld [vmem:[#allocation2 + $0x70] sm:$0xff] }
  0x15   :  { %531 = vmatpush1.msra.mxu0 %v504_v10  ;;  %v272_v23 = vand.u32 2147483647, %v208_v19  ;;  %v276_v29 = vand.u32 2147483647, %v212_v25  ;;  %v210_v31 = vsel %vm146_vm2, 0.0, %v2669_v26  ;;  %vm154_vm5 = vcmp.eq.s32.totalorder %v2638_v14, %v2607_v6  ;;  %v2727_v53 = vld [vmem:[#allocation2 + $0x78] sm:$0xff] }
  0x16   :  { %532 = vmatprep.subr.mxu0 %v3944_v1  ;;  %v274_v34 = vand.u32 2147483647, %v210_v31  ;;  %v275_v35 = vand.u32 2147483647, %v2671_v27  ;;  %vm156_vm6 = vcmp.eq.s32.totalorder %v2647_v17, %v2607_v6  ;;  %v214_v39 = vsel %vm150_vm3, 0.0, %v2692_v36  ;;  %v2733_v55 = vld [vmem:[#allocation2 + $0x80] sm:$0xff] }
  0x17   :  { %533 = vmatpush1.msra.mxu0 %v503_v13  ;;  %v338_v33 = vadd.f32 %v273_v20, %v272_v23  ;;  %v344_v37 = vadd.f32 %v277_v30, %v276_v29  ;;  %v2708_v42 = vadd.s32 80, %v2596_v2  ;;  %v2711_v43 = vadd.s32 88, %v2596_v2  ;;  %v2735_v56 = vld [vmem:[#allocation2 + $0x88] sm:$0xff]  ;;  %v498_v59 = vld [vmem:[%s3937_s1 + $0x30] sm:$0xff]  ;;  %v2761_v13 = vld [vmem:[#allocation2 + $0x98] sm:$0xff] }
  0x18   :  { %534 = vmatprep.subr.mxu0 %v3944_v1  ;;  %v341_v44 = vadd.f32 %v275_v35, %v274_v34  ;;  %v278_v45 = vand.u32 2147483647, %v214_v39  ;;  %v279_v46 = vand.u32 2147483647, %v2697_v38  ;;  %v216_v47 = vsel %vm152_vm4, 0.0, %v2703_v40  ;;  %v497_v63 = vld [vmem:[%s3937_s1 + $0x28] sm:$0xff] }
  0x19   :  { %535 = vmatpush1.msra.mxu0 %v502_v18  ;;  %339 = vadd.xlane.f32.xlu0 %v338_v33  ;;  %v280_v49 = vand.u32 2147483647, %v216_v47  ;;  %v281_v50 = vand.u32 2147483647, %v2705_v41  ;;  %vm158_vm7 = vcmp.eq.s32.totalorder %v2661_v22, %v2607_v6  ;;  %v218_v54 = vsel %vm154_vm5, 0.0, %v2723_v51  ;;  %v2758_v7 = vld [vmem:[#allocation2 + $0x90] sm:$0xff] }
  0x1a   :  { %536 = vmatprep.subr.mxu0 %v3944_v1  ;;  %345 = vadd.xlane.f32.xlu1 %v344_v37  ;;  %v347_v52 = vadd.f32 %v279_v46, %v278_v45  ;;  %v2738_v57 = vadd.s32 96, %v2596_v2  ;;  %v2741_v58 = vadd.s32 104, %v2596_v2  ;;  %v282_v60 = vand.u32 2147483647, %v218_v54  ;;  %v2767_v19 = vld [vmem:[#allocation2 + $0xa0] sm:$0xff]  ;;  %v2769_v20 = vld [vmem:[#allocation2 + $0xa8] sm:$0xff] }
  0x1b   :  { %537 = vmatpush1.msra.mxu0 %v501_v28  ;;  %v283_v61 = vand.u32 2147483647, %v2727_v53  ;;  %v220_v62 = vsel %vm156_vm6, 0.0, %v2733_v55  ;;  %vm160_vm8 = vcmp.eq.s32.totalorder %v2708_v42, %v2607_v6  ;;  %v350_v0 = vadd.f32 %v281_v50, %v280_v49  ;;  %v496_v30 = vld [vmem:[%s3937_s1 + $0x20] sm:$0xff]  ;;  %v495_v31 = vld [vmem:[%s3937_s1 + $0x18] sm:$0xff]  ;;  %v2790_v33 = vld [vmem:[#allocation2 + $0xb0] sm:$0xff] }
  0x1c   :  { %538 = vmatprep.subr.mxu0 %v3944_v1  ;;  %4020 = vst [vmem:[#allocation5_spill] sm:$0xff] %v2741_v58  ;;  %v284_v3 = vand.u32 2147483647, %v220_v62  ;;  %v285_v4 = vand.u32 2147483647, %v2735_v56  ;;  %v222_v18 = vsel %vm158_vm7, 0.0, %v2758_v7  ;;  %vm162_vm9 = vcmp.eq.s32.totalorder %v2711_v43, %v2607_v6 }
  0x1d   :  { %539 = vmatpush1.msra.mxu0 %v500_v32  ;;  %342 = vadd.xlane.f32.xlu0 %v341_v44  ;;  %v353_v10 = vadd.f32 %v283_v61, %v282_v60  ;;  %v2774_v23 = vadd.s32 112, %v2596_v2  ;;  %v286_v25 = vand.u32 2147483647, %v222_v18  ;;  %v287_v28 = vand.u32 2147483647, %v2761_v13  ;;  %v2796_v39 = vld [vmem:[#allocation2 + $0xb8] sm:$0xff] }
  0x1e   :  { %540 = vmatprep.subr.mxu0 %v3944_v1  ;;  %348 = vadd.xlane.f32.xlu1 %v347_v52  ;;  %v224_v29 = vsel %vm160_vm8, 0.0, %v2767_v19  ;;  %vm164_vm10 = vcmp.eq.s32.totalorder %v2738_v57, %v2607_v6  ;;  %v2793_v34 = vadd.s32 120, %v2596_v2  ;;  %v356_v35 = vadd.f32 %v285_v4, %v284_v3  ;;  %v2802_v45 = vld [vmem:[#allocation2 + $0xc0] sm:$0xff]  ;;  %v2804_v46 = vld [vmem:[#allocation2 + $0xc8] sm:$0xff]  ;;  %v494_v54 = vld [vmem:[%s3937_s1 + $0x10] sm:$0xff] }
  0x1f   :  { %541 = vmatpush1.msra.mxu0 %v499_v48  ;;  %4021 = vst [vmem:[#allocation6_spill] sm:$0xff] %v2774_v23  ;;  %v288_v32 = vand.u32 2147483647, %v224_v29  ;;  %v289_v37 = vand.u32 2147483647, %v2769_v20  ;;  %v226_v44 = vsel %vm162_vm9, 0.0, %v2790_v33  ;;  %vm166_vm11 = vcmp.eq.s32.totalorder %v2741_v58, %v2607_v6 }
  0x20   :  { %542 = vmatprep.subr.mxu0 %v3944_v1  ;;  %4022 = vst [vmem:[#allocation7_spill] sm:$0xff] %v2793_v34  ;;  %v359_v47 = vadd.f32 %v287_v28, %v286_v25  ;;  %v290_v48 = vand.u32 2147483647, %v226_v44  ;;  %v291_v49 = vand.u32 2147483647, %v2796_v39  ;;  %v228_v50 = vsel %vm164_vm10, 0.0, %v2802_v45 }
  0x21   :  { %543 = vmatpush1.msra.mxu0 %v498_v59  ;;  %351 = vadd.xlane.f32.xlu0 %v350_v0  ;;  %v2814_v52 = vld [vmem:[#allocation2 + $0x8] sm:$0xff]  ;;  %vm4019_vm12 = vcmp.eq.s32.totalorder %v2774_v23, %v2607_v6  ;;  %v2823_v59 = vadd.s32 128, %v2596_v2  ;;  %v2826_v60 = vadd.s32 128, %v2607_v6  ;;  %v2832_v62 = vld [vmem:[#allocation2 + $0xd0] sm:$0xff]  ;;  %vm3953_vm13 = vcmp.eq.s32.totalorder %v2793_v34, %v2607_v6  ;;  %v2846_v25 = vld [vmem:[#allocation2 + $0xe0] sm:$0xff] }
  0x22   :  { %544 = vmatprep.subr.mxu0 %v3944_v1  ;;  %354 = vadd.xlane.f32.xlu1 %v353_v10  ;;  %v493_v61 = vld [vmem:[%s3937_s1 + $0x8] sm:$0xff]  ;;  %4024 = vst [vmem:[#allocation9_spill] sm:$0xff] %v2832_v62  ;;  %v2839_v0 = vadd.s32 136, %v2596_v2  ;;  %v362_v3 = vadd.f32 %v289_v37, %v288_v32  ;;  %v292_v4 = vand.u32 2147483647, %v228_v50  ;;  %v230_v18 = vsel %vm166_vm11, 0.0, %v2832_v62 }
  0x23   :  { %545 = vmatpush1.msra.mxu0 %v497_v63  ;;  %588 = vmatprep.mubr.f32.mxu0 %v2814_v52  ;;  %4023 = vst [vmem:[#allocation8_spill] sm:$0xff] %v2823_v59  ;;  %v2834_v63 = vld [vmem:[#allocation2 + $0xd8] sm:$0xff]  ;;  %v293_v10 = vand.u32 2147483647, %v2804_v46  ;;  %4027 = vst [vmem:[#allocation12_spill] sm:$0xff] %v2846_v25  ;;  %v365_v28 = vadd.f32 %v291_v49, %v290_v48  ;;  %v232_v32 = vsel %vm4019_vm12, 0.0, %v2846_v25 }
  0x24   :  { %546 = vmatprep.subr.mxu0 %v3944_v1  ;;  %4025 = vst [vmem:[#allocation10_spill] sm:$0xff] %v2834_v63  ;;  %4026 = vst [vmem:[#allocation11_spill] sm:$0xff] %v2839_v0  ;;  %v294_v29 = vand.u32 2147483647, %v230_v18  ;;  %v2858_v37 = vld [vmem:[#allocation2 + $0xf8] sm:$0xff]  ;;  %vm3954_vm14 = vcmp.eq.s32.totalorder %v2823_v59, %v2826_v60  ;;  %v2863_v44 = vadd.s32 144, %v2596_v2  ;;  %vm3961_vm15 = vcmp.eq.s32.totalorder %v2839_v0, %v2826_v60 }
  0x25   :  { %547 = vmatpush1.msra.mxu0 %v496_v30  ;;  %357 = vadd.xlane.f32.xlu0 %v356_v35  ;;  %v295_v30 = vand.u32 2147483647, %v2834_v63  ;;  %v2856_v35 = vld [vmem:[#allocation2 + $0xf0] sm:$0xff]  ;;  %4030 = vst [vmem:[#allocation15_spill] sm:$0xff] %v2858_v37  ;;  %v2873_v49 = vld [vmem:[#allocation2 + $0x108] sm:$0xff]  ;;  %v2878_v50 = vadd.s32 152, %v2596_v2  ;;  %v368_v18 = vadd.f32 %v293_v10, %v292_v4 }
  0x26   :  { %548 = vmatprep.subr.mxu0 %v3944_v1  ;;  %360 = vadd.xlane.f32.xlu1 %v359_v47  ;;  %4029 = vst [vmem:[#allocation14_spill] sm:$0xff] %v2856_v35  ;;  %4031 = vst [vmem:[#allocation16_spill] sm:$0xff] %v2863_v44  ;;  %v492_v47 = vld [vmem:[%s3937_s1] sm:$0xff]  ;;  %v234_v48 = vsel %vm3953_vm13, 0.0, %v2856_v35  ;;  %v2884_v34 = vld [vmem:[#allocation2 + $0x118] sm:$0xff]  ;;  %v4035_v35 = vmov 0.0   ;;  %vm3962_vm13 = vcmp.eq.s32.totalorder %v2863_v44, %v2826_v60 }
  0x27   :  { %549 = vmatpush1.msra.mxu0 %v495_v31  ;;  %v2850_v31 = vld [vmem:[#allocation2 + $0xe8] sm:$0xff]  ;;  %4032 = vst [vmem:[#allocation17_spill] sm:$0xff] %v2873_v49  ;;  %4033 = vst [vmem:[#allocation18_spill] sm:$0xff] %v2878_v50  ;;  %v371_v23 = vadd.f32 %v295_v30, %v294_v29  ;;  %v298_v62 = vand.u32 2147483647, %v234_v48  ;;  %v2888_v63 = vld [vmem:[#allocation2 + $0x100] sm:$0xff] }
  0x28   :  { %550 = vmatprep.subr.mxu0 %v3944_v1  ;;  %4028 = vst [vmem:[#allocation13_spill] sm:$0xff] %v2850_v31  ;;  %v297_v25 = vand.u32 2147483647, %v2850_v31  ;;  %4034 = vst [vmem:[#allocation19_spill] sm:$0xff] %v2884_v34  ;;  %v299_v58 = vand.u32 2147483647, %v2858_v37 }
  0x29   :  { %551 = vmatpush1.msra.mxu0 %v494_v54  ;;  %v523_v54 = vld [vmem:[%s3937_s1 + $0xf8] sm:$0xff]  ;;  %363 = vadd.xlane.f32.xlu0 %v362_v3  ;;  %4036 = vst [vmem:[#allocation20_spill] sm:$0xff] %v2888_v63  ;;  %v2894_v3 = vld [vmem:[#allocation2 + $0x110] sm:$0xff]  ;;  %v239_v4 = vsel %vm3961_vm15, 0.0, %v2884_v34  ;;  %v2900_v10 = vld [vmem:[#allocation2 + $0x128] sm:$0xff] }
  0x2a   :  { %552 = vmatprep.subr.mxu0 %v3944_v1  ;;  %v296_v1 = vand.u32 2147483647, %v232_v32  ;;  %366 = vadd.xlane.f32.xlu1 %v365_v28  ;;  %4037 = vst [vmem:[#allocation21_spill] sm:$0xff] %v2894_v3  ;;  %4038 = vst [vmem:[#allocation22_spill] sm:$0xff] %v2900_v10  ;;  %v2905_v28 = vadd.s32 160, %v2596_v2  ;;  %v522_v29 = vld [vmem:[%s3937_s1 + $0xf0] sm:$0xff] }
  0x2b   :  { %553 = vmatpush1.msra.mxu0 %v493_v61  ;;  %v237_v61 = vsel %vm3954_vm14, 0.0, %v2873_v49  ;;  %v2911_v30 = vld [vmem:[#allocation2 + $0x138] sm:$0xff]  ;;  %vm3969_vm14 = vcmp.eq.s32.totalorder %v2878_v50, %v2826_v60  ;;  %v2916_v32 = vadd.s32 168, %v2596_v2  ;;  %v300_v34 = vand.u32 2147483647, %v2888_v63  ;;  %v2924_v31 = vld [vmem:[#allocation2 + $0x120] sm:$0xff] }
  0x2c   :  { %554 = vmatprep.subr.mxu0 %v4035_v35  ;;  %4039 = vst [vmem:[#allocation23_spill] sm:$0xff] %v2905_v28  ;;  %4040 = vst [vmem:[#allocation24_spill] sm:$0xff] %v2911_v30  ;;  %v374_v48 = vadd.f32 %v297_v25, %v296_v1  ;;  %v301_v0 = vand.u32 2147483647, %v237_v61  ;;  %v377_v49 = vadd.f32 %v299_v58, %v298_v62  ;;  %v302_v59 = vand.u32 2147483647, %v2894_v3 }
  0x2d   :  { %555 = vmatpush1.msra.mxu0 %v492_v47  ;;  %4041 = vst [vmem:[#allocation25_spill] sm:$0xff] %v2916_v32  ;;  %v521_v47 = vld [vmem:[%s3937_s1 + $0xe8] sm:$0xff]  ;;  %369 = vadd.xlane.f32.xlu0 %v368_v18  ;;  %v303_v37 = vand.u32 2147483647, %v239_v4  ;;  %4042 = vst [vmem:[#allocation26_spill] sm:$0xff] %v2924_v31  ;;  %v2930_v18 = vld [vmem:[#allocation2 + $0x130] sm:$0xff]  ;;  %vm3970_vm15 = vcmp.eq.s32.totalorder %v2905_v28, %v2826_v60 }
  0x2e   :  { %556 = vmatprep.subr.mxu0 %v4035_v35  ;;  %372 = vadd.xlane.f32.xlu1 %v371_v23  ;;  %4043 = vst [vmem:[#allocation27_spill] sm:$0xff] %v2930_v18  ;;  %v243_v1 = vsel %vm3969_vm14, 0.0, %v2911_v30  ;;  %v2936_v23 = vld [vmem:[#allocation2 + $0x148] sm:$0xff]  ;;  %v2941_v58 = vadd.s32 176, %v2596_v2  ;;  %v520_v62 = vld [vmem:[%s3937_s1 + $0xe0] sm:$0xff]  ;;  %v2947_v25 = vld [vmem:[#allocation2 + $0x158] sm:$0xff] }
  0x2f   :  { %557 = vmatpush2.msra.mxu0 %v523_v54  ;;  %v241_v54 = vsel %vm3962_vm13, 0.0, %v2900_v10  ;;  %4044 = vst [vmem:[#allocation28_spill] sm:$0xff] %v2936_v23  ;;  %4046 = vst [vmem:[#allocation30_spill] sm:$0xff] %v2947_v25  ;;  %vm3977_vm13 = vcmp.eq.s32.totalorder %v2916_v32, %v2826_v60  ;;  %v2952_v61 = vadd.s32 184, %v2596_v2  ;;  %v519_v4 = vld [vmem:[%s3937_s1 + $0xd8] sm:$0xff]  ;;  %v383_v10 = vadd.f32 %v303_v37, %v302_v59  ;;  %v2960_v63 = vld [vmem:[#allocation2 + $0x140] sm:$0xff] }
  0x30   :  { %558 = vmatprep.subr.mxu0 %v4035_v35  ;;  %4045 = vst [vmem:[#allocation29_spill] sm:$0xff] %v2941_v58  ;;  %v304_v30 = vand.u32 2147483647, %v2924_v31  ;;  %v305_v50 = vand.u32 2147483647, %v241_v54  ;;  %4048 = vst [vmem:[#allocation32_spill] sm:$0xff] %v2960_v63  ;;  %vm3978_vm14 = vcmp.eq.s32.totalorder %v2941_v58, %v2826_v60 }
  0x31   :  { %559 = vmatpush2.msra.mxu0 %v522_v29  ;;  %4047 = vst [vmem:[#allocation31_spill] sm:$0xff] %v2952_v61  ;;  %375 = vadd.xlane.f32.xlu0 %v374_v48  ;;  %v380_v29 = vadd.f32 %v301_v0, %v300_v34  ;;  %v306_v3 = vand.u32 2147483647, %v2930_v18  ;;  %v307_v44 = vand.u32 2147483647, %v243_v1  ;;  %v2966_v48 = vld [vmem:[#allocation2 + $0x150] sm:$0xff] }
  0x32   :  { %560 = vmatprep.subr.mxu0 %v4035_v35  ;;  %378 = vadd.xlane.f32.xlu1 %v377_v49  ;;  %4049 = vst [vmem:[#allocation33_spill] sm:$0xff] %v2966_v48  ;;  %v247_v34 = vsel %vm3977_vm13, 0.0, %v2947_v25  ;;  %v2972_v0 = vld [vmem:[#allocation2 + $0x168] sm:$0xff]  ;;  %v2977_v59 = vadd.s32 192, %v2596_v2  ;;  %v518_v37 = vld [vmem:[%s3937_s1 + $0xd0] sm:$0xff]  ;;  %v2983_v49 = vld [vmem:[#allocation2 + $0x178] sm:$0xff] }
  0x33   :  { %561 = vmatpush2.msra.mxu0 %v521_v47  ;;  %v245_v47 = vsel %vm3970_vm15, 0.0, %v2936_v23  ;;  %4050 = vst [vmem:[#allocation34_spill] sm:$0xff] %v2972_v0  ;;  %4052 = vst [vmem:[#allocation36_spill] sm:$0xff] %v2983_v49  ;;  %vm3985_vm15 = vcmp.eq.s32.totalorder %v2952_v61, %v2826_v60  ;;  %v2988_v54 = vadd.s32 200, %v2596_v2  ;;  %v517_v1 = vld [vmem:[%s3937_s1 + $0xc8] sm:$0xff]  ;;  %v389_v23 = vadd.f32 %v307_v44, %v306_v3  ;;  %v2996_v31 = vld [vmem:[#allocation2 + $0x160] sm:$0xff] }
  0x34   :  { %562 = vmatprep.subr.mxu0 %v4035_v35  ;;  %4051 = vst [vmem:[#allocation35_spill] sm:$0xff] %v2977_v59  ;;  %v308_v25 = vand.u32 2147483647, %v2960_v63  ;;  %v309_v32 = vand.u32 2147483647, %v245_v47  ;;  %4054 = vst [vmem:[#allocation38_spill] sm:$0xff] %v2996_v31  ;;  %vm3986_vm13 = vcmp.eq.s32.totalorder %v2977_v59, %v2826_v60 }
  0x35   :  { %563 = vmatpush2.msra.mxu0 %v520_v62  ;;  %4053 = vst [vmem:[#allocation37_spill] sm:$0xff] %v2988_v54  ;;  %381 = vadd.xlane.f32.xlu0 %v380_v29  ;;  %v386_v62 = vadd.f32 %v305_v50, %v304_v30  ;;  %v310_v18 = vand.u32 2147483647, %v2966_v48  ;;  %v311_v28 = vand.u32 2147483647, %v247_v34  ;;  %v3002_v29 = vld [vmem:[#allocation2 + $0x170] sm:$0xff] }
  0x36   :  { %564 = vmatprep.subr.mxu0 %v4035_v35  ;;  %384 = vadd.xlane.f32.xlu1 %v383_v10  ;;  %4055 = vst [vmem:[#allocation39_spill] sm:$0xff] %v3002_v29  ;;  %v251_v50 = vsel %vm3985_vm15, 0.0, %v2983_v49  ;;  %v3008_v10 = vld [vmem:[#allocation2 + $0x188] sm:$0xff]  ;;  %v3013_v44 = vadd.s32 208, %v2596_v2  ;;  %v516_v3 = vld [vmem:[%s3937_s1 + $0xc0] sm:$0xff]  ;;  %v3019_v30 = vld [vmem:[#allocation2 + $0x198] sm:$0xff] }
  0x37   :  { %565 = vmatpush2.msra.mxu0 %v519_v4  ;;  %v249_v4 = vsel %vm3978_vm14, 0.0, %v2972_v0  ;;  %4056 = vst [vmem:[#allocation40_spill] sm:$0xff] %v3008_v10  ;;  %4058 = vst [vmem:[#allocation42_spill] sm:$0xff] %v3019_v30  ;;  %vm3993_vm14 = vcmp.eq.s32.totalorder %v2988_v54, %v2826_v60  ;;  %v3024_v47 = vadd.s32 216, %v2596_v2  ;;  %v515_v34 = vld [vmem:[%s3937_s1 + $0xb8] sm:$0xff]  ;;  %v395_v0 = vadd.f32 %v311_v28, %v310_v18  ;;  %v3032_v63 = vld [vmem:[#allocation2 + $0x180] sm:$0xff] }
  0x38   :  { %566 = vmatprep.subr.mxu0 %v4035_v35  ;;  %4057 = vst [vmem:[#allocation41_spill] sm:$0xff] %v3013_v44  ;;  %v312_v49 = vand.u32 2147483647, %v2996_v31  ;;  %v313_v61 = vand.u32 2147483647, %v249_v4  ;;  %4060 = vst [vmem:[#allocation44_spill] sm:$0xff] %v3032_v63  ;;  %vm4001_vm15 = vcmp.eq.s32.totalorder %v3013_v44, %v2826_v60 }
  0x39   :  { %567 = vmatpush2.msra.mxu0 %v518_v37  ;;  %4059 = vst [vmem:[#allocation43_spill] sm:$0xff] %v3024_v47  ;;  %387 = vadd.xlane.f32.xlu0 %v386_v62  ;;  %v392_v37 = vadd.f32 %v309_v32, %v308_v25  ;;  %v314_v48 = vand.u32 2147483647, %v3002_v29  ;;  %v315_v58 = vand.u32 2147483647, %v251_v50  ;;  %v3038_v62 = vld [vmem:[#allocation2 + $0x190] sm:$0xff] }
  0x3a   :  { %568 = vmatprep.subr.mxu0 %v4035_v35  ;;  %390 = vadd.xlane.f32.xlu1 %v389_v23  ;;  %4061 = vst [vmem:[#allocation45_spill] sm:$0xff] %v3038_v62  ;;  %v255_v32 = vsel %vm3993_vm14, 0.0, %v3019_v30  ;;  %v3044_v23 = vld [vmem:[#allocation2 + $0x1a8] sm:$0xff]  ;;  %v3049_v28 = vadd.s32 224, %v2596_v2  ;;  %v514_v18 = vld [vmem:[%s3937_s1 + $0xb0] sm:$0xff]  ;;  %v3055_v25 = vld [vmem:[#allocation2 + $0x1b8] sm:$0xff] }
  0x3b   :  { %569 = vmatpush2.msra.mxu0 %v517_v1  ;;  %v253_v1 = vsel %vm3986_vm13, 0.0, %v3008_v10  ;;  %4062 = vst [vmem:[#allocation46_spill] sm:$0xff] %v3044_v23  ;;  %4064 = vst [vmem:[#allocation48_spill] sm:$0xff] %v3055_v25  ;;  %vm3994_vm13 = vcmp.eq.s32.totalorder %v3024_v47, %v2826_v60  ;;  %v3060_v4 = vadd.s32 232, %v2596_v2  ;;  %v513_v50 = vld [vmem:[%s3937_s1 + $0xa8] sm:$0xff]  ;;  %v401_v10 = vadd.f32 %v315_v58, %v314_v48  ;;  %v3068_v31 = vld [vmem:[#allocation2 + $0x1a0] sm:$0xff] }
  0x3c   :  { %570 = vmatprep.subr.mxu0 %v4035_v35  ;;  %4063 = vst [vmem:[#allocation47_spill] sm:$0xff] %v3049_v28  ;;  %v316_v30 = vand.u32 2147483647, %v3032_v63  ;;  %v317_v54 = vand.u32 2147483647, %v253_v1  ;;  %vm4002_vm14 = vcmp.eq.s32.totalorder %v3049_v28, %v2826_v60  ;;  %v3085_v58 = vadd.s32 240, %v2596_v2 }
  0x3d   :  { %571 = vmatpush2.msra.mxu0 %v516_v3  ;;  %4065 = vst [vmem:[#allocation49_spill] sm:$0xff] %v3060_v4  ;;  %393 = vadd.xlane.f32.xlu0 %v392_v37  ;;  %v398_v3 = vadd.f32 %v313_v61, %v312_v49  ;;  %v318_v29 = vand.u32 2147483647, %v3038_v62  ;;  %v319_v59 = vand.u32 2147483647, %v255_v32  ;;  %v3074_v37 = vld [vmem:[#allocation2 + $0x1b0] sm:$0xff] }
  0x3e   :  { %572 = vmatprep.subr.mxu0 %v4035_v35  ;;  %396 = vadd.xlane.f32.xlu1 %v395_v0  ;;  %4066 = vst [vmem:[#allocation50_spill] sm:$0xff] %v3074_v37  ;;  %v259_v61 = vsel %vm3994_vm13, 0.0, %v3055_v25  ;;  %v3080_v0 = vld [vmem:[#allocation2 + $0x1c8] sm:$0xff]  ;;  %v3091_v48 = vld [vmem:[%s3937_s1 + $0xa0] sm:$0xff]  ;;  %v3093_v49 = vld [vmem:[#allocation2 + $0x1d8] sm:$0xff]  ;;  %vm4003_vm13 = vcmp.eq.s32.totalorder %v3060_v4, %v2826_v60  ;;  %v3098_v1 = vadd.s32 248, %v2596_v2 }
  0x3f   :  { %573 = vmatpush2.msra.mxu0 %v515_v34  ;;  %v257_v34 = vsel %vm4001_vm15, 0.0, %v3044_v23  ;;  %4067 = vst [vmem:[#allocation51_spill] sm:$0xff] %v3080_v0  ;;  %4068 = vst [vmem:[#allocation52_spill] sm:$0xff] %v3091_v48  ;;  %v3103_v32 = vld [vmem:[%s3937_s1 + $0x98] sm:$0xff]  ;;  %v320_v25 = vand.u32 2147483647, %v3068_v31  ;;  %v407_v23 = vadd.f32 %v319_v59, %v318_v29  ;;  %vm4011_vm15 = vcmp.eq.s32.totalorder %v3085_v58, %v2826_v60 }
  0x40   :  { %574 = vmatprep.subr.mxu0 %v4035_v35  ;;  %4069 = vst [vmem:[#allocation53_spill] sm:$0xff] %v3093_v49  ;;  %4070 = vst [vmem:[#allocation54_spill] sm:$0xff] %v3098_v1  ;;  %v321_v47 = vand.u32 2147483647, %v257_v34  ;;  %v322_v62 = vand.u32 2147483647, %v3074_v37 }
  0x41   :  { %575 = vmatpush2.msra.mxu0 %v514_v18  ;;  %4071 = vst [vmem:[#allocation55_spill] sm:$0xff] %v3103_v32  ;;  %399 = vadd.xlane.f32.xlu0 %v398_v3  ;;  %v404_v18 = vadd.f32 %v317_v54, %v316_v30  ;;  %v323_v44 = vand.u32 2147483647, %v259_v61  ;;  %v3108_v63 = vld [vmem:[#allocation2 + $0x1c0] sm:$0xff]  ;;  %v3115_v54 = vld [vmem:[#allocation2 + $0x1d0] sm:$0xff]  ;;  %v3121_v59 = vld [vmem:[#allocation2 + $0x1e8] sm:$0xff] }
  0x42   :  { %576 = vmatprep.subr.mxu0 %v4035_v35  ;;  %402 = vadd.xlane.f32.xlu1 %v401_v10  ;;  %4072 = vst [vmem:[#allocation56_spill] sm:$0xff] %v3115_v54  ;;  %v263_v10 = vsel %vm4003_vm13, 0.0, %v3093_v49  ;;  %4073 = vst [vmem:[#allocation57_spill] sm:$0xff] %v3121_v59  ;;  %v3129_v29 = vld [vmem:[%s3937_s1 + $0x90] sm:$0xff]  ;;  %v3133_v30 = vld [vmem:[#allocation2 + $0x1f8] sm:$0xff]  ;;  %vm4012_vm13 = vcmp.eq.s32.totalorder %v3098_v1, %v2826_v60  ;;  %v106_v34 = vadd.s32 8, %v2596_v2 }
  0x43   :  { %577 = vmatpush2.msra.mxu0 %v513_v50  ;;  %v261_v50 = vsel %vm4002_vm14, 0.0, %v3080_v0  ;;  %4074 = vst [vmem:[#allocation58_spill] sm:$0xff] %v3129_v29  ;;  %vm140_vm14 = vcmp.eq.s32.totalorder %v2596_v2, %v2607_v6  ;;  %4075 = vst [vmem:[#allocation59_spill] sm:$0xff] %v3133_v30  ;;  %v3141_v3 = vld [vmem:[%s3937_s1 + $0x88] sm:$0xff]  ;;  %v410_v61 = vadd.f32 %v321_v47, %v320_v25  ;;  %v326_v0 = vand.u32 2147483647, %v3115_v54 }
  0x44   :  { %578 = vmatprep.subr.mxu0 %v4035_v35  ;;  %4076 = vst [vmem:[#allocation60_spill] sm:$0xff] %v3141_v3  ;;  %v325_v49 = vand.u32 2147483647, %v261_v50  ;;  %v413_v4 = vadd.f32 %v323_v44, %v322_v62  ;;  %v327_v37 = vand.u32 2147483647, %v263_v10  ;;  %v265_v28 = vsel %vm4011_vm15, 0.0, %v3121_v59  ;;  %vm3170_vm15 = vmneg %vm140_vm14 }
  0x45   :  { %579 = vmatpush2.msra.mxu0 %v3091_v48  ;;  %405 = vadd.xlane.f32.xlu0 %v404_v18  ;;  %v324_v48 = vand.u32 2147483647, %v3108_v63  ;;  %v3154_v47 = vld [vmem:[#allocation2 + $0x1f0] sm:$0xff]  ;;  %v3164_v44 = vld [vmem:[%s3937_s1 + $0x80] sm:$0xff]  ;;  %v43_v18 = vld [vmem:[#allocation2 + $0x18] sm:$0xff] }
  0x46   :  { %580 = vmatprep.subr.mxu0 %v4035_v35  ;;  %408 = vadd.xlane.f32.xlu1 %v407_v23  ;;  %v267_v23 = vsel %vm4012_vm13, 0.0, %v3133_v30  ;;  %v40_v62 = vld [vmem:[#allocation2] sm:$0xff]  ;;  %vm142_vm13 = vcmp.eq.s32.totalorder %v106_v34, %v2607_v6  ;;  %v42_v30 = vld [vmem:[#allocation2 + $0x10] sm:$0xff]  ;;  %v330_v1 = vand.u32 2147483647, %v3154_v47  ;;  %v788_v5 = vld [vmem:[%s3939_s3 + $0x18] sm:$0xff] }
  0x47   :  { %581 = vmatpush2.msra.mxu0 %v3103_v32  ;;  %v3147_v32 = vld [vmem:[#allocation2 + $0x1e0] sm:$0xff]  ;;  %v416_v50 = vadd.f32 %v325_v49, %v324_v48  ;;  %v331_v59 = vand.u32 2147483647, %v267_v23  ;;  %v204_v54 = vsel %vm140_vm14, 0.0, %v40_v62  ;;  %v206_v48 = vsel %vm142_vm13, 0.0, %v42_v30  ;;  %vm1975_vm12 = vmneg %vm142_vm13  ;;  %2423 = vmatprep.subr.mxu1 %v788_v5  ;;  %v4079_v8 = vld [vmem:[#allocation10_spill] sm:$0xff] }
  0x48   :  { %582 = vmatprep.subr.mxu0 %v4035_v35  ;;  %v328_v10 = vand.u32 2147483647, %v3147_v32  ;;  %vm1977_vm14 = vmneg %vm144_vm0  ;;  %2427 = vmatpush3.msra.mxu1 %v788_v5  ;;  %v4081_v11 = vld [vmem:[#allocation9_spill] sm:$0xff]  ;;  %v4083_v14 = vld [vmem:[#allocation6_spill] sm:$0xff] }
  0x49   :  { %583 = vmatpush2.msra.mxu0 %v3129_v29  ;;  %411 = vadd.xlane.f32.xlu0 %v410_v61  ;;  %v329_v29 = vand.u32 2147483647, %v265_v28  ;;  %v425_v2 = vadd.f32 %v331_v59, %v330_v1  ;;  %vm1979_vm13 = vmneg %vm146_vm2  ;;  %v4082_v12 = vld [vmem:[#allocation13_spill] sm:$0xff]  ;;  %v4087_v17 = vld [vmem:[#allocation7_spill] sm:$0xff] }
  0x4a   :  { %584 = vmatprep.subr.mxu0 %v4035_v35  ;;  %414 = vadd.xlane.f32.xlu1 %v413_v4  ;;  %v268_v4 = vand.u32 2147483647, %v204_v54  ;;  %vm1981_vm0 = vmneg %vm148_vm1  ;;  %v4091_v22 = vld [vmem:[#allocation14_spill] sm:$0xff]  ;;  %v785_v42 = vld [vmem:[%s3939_s3] sm:$0xff] }
  0x4b   :  { %585 = vmatpush2.msra.mxu0 %v3141_v3  ;;  %v419_v3 = vadd.f32 %v327_v37, %v326_v0  ;;  %v422_v28 = vadd.f32 %v329_v29, %v328_v10  ;;  %v271_v37 = vand.u32 2147483647, %v43_v18  ;;  %v270_v0 = vand.u32 2147483647, %v206_v48  ;;  %vm1985_vm2 = vmneg %vm152_vm4  ;;  %v4100_v43 = vld [vmem:[#allocation22_spill] sm:$0xff]  ;;  %v4107_v57 = vld [vmem:[#allocation27_spill] sm:$0xff] }
  0x4c   :  { %586 = vmatprep.subr.mxu0 %v4035_v35  ;;  %v269_v35 = vand.u32 2147483647, %v2814_v52  ;;  %vm1987_vm1 = vmneg %vm154_vm5  ;;  %v4119_v59 = vld [vmem:[#allocation38_spill] sm:$0xff]  ;;  %v4120_v29 = vld [vmem:[#allocation36_spill] sm:$0xff] }
  0x4d   :  { %587 = vmatpush2.msra.mxu0 %v3164_v44  ;;  %417 = vadd.xlane.f32.xlu0 %v416_v50  ;;  %v335_v49 = vadd.f32 %v271_v37, %v270_v0  ;;  %vm1991_vm4 = vmneg %vm158_vm7  ;;  %v4123_v61 = vld [vmem:[#allocation39_spill] sm:$0xff]  ;;  %v4124_v23 = vld [vmem:[#allocation40_spill] sm:$0xff] }
  0x4e   :  { %1974 = vmatmul.mubr.msk.f32.vlgmr.msra.gmra.mxu0 %vm3170_vm15, %v40_v62  ;;  %420 = vadd.xlane.f32.xlu1 %v419_v3  ;;  %v332_v52 = vadd.f32 %v269_v35, %v268_v4  ;;  %vm1993_vm5 = vmneg %vm160_vm8  ;;  %v4125_v62 = vld [vmem:[#allocation37_spill] sm:$0xff]  ;;  %v4128_v10 = vld [vmem:[#allocation42_spill] sm:$0xff] }
  0x4f   :  { %593 = vmatprep.mubr.f32.mxu0 %v43_v18  ;;  %2247 = vmatprep.subr.mxu0 %v788_v5  ;;  %vm1997_vm7 = vmneg %vm164_vm10  ;;  %vm4088_vm10 = vcmp.eq.s32.totalorder %v4087_v17, %v2607_v6  ;;  %v4127_v18 = vld [vmem:[#allocation44_spill] sm:$0xff]  ;;  %v4129_v48 = vld [vmem:[#allocation41_spill] sm:$0xff] }
  0x50   :  { %2248 = vmatpush3.msra.mxu0 %v788_v5  ;;  %vm1999_vm8 = vmneg %vm166_vm11  ;;  %v4132_v4 = vld [vmem:[#allocation46_spill] sm:$0xff]  ;;  %v4133_v37 = vld [vmem:[#allocation43_spill] sm:$0xff] }
  0x51   :  { %423 = vadd.xlane.f32.xlu0 %v422_v28  ;;  %v4131_v28 = vld [vmem:[#allocation45_spill] sm:$0xff]  ;;  %v4138_v5 = vld [vmem:[#allocation50_spill] sm:$0xff]  ;;  %v4139_v9 = vld [vmem:[#allocation51_spill] sm:$0xff] }
  0x52   :  { %1976 = vmatmul.mubr.msk.f32.gmra.mxu0 %vm1975_vm12, %v42_v30  ;;  %426 = vadd.xlane.f32.xlu1 %v425_v2  ;;  %vm1983_vm12 = vmneg %vm150_vm3  ;;  %v4121_v30 = vld [vmem:[#allocation35_spill] sm:$0xff]  ;;  %v4145_v17 = vld [vmem:[#allocation57_spill] sm:$0xff] }
  0x53   :  { %598 = vmatprep.mubr.f32.mxu0 %v2642_v16  ;;  %vm1989_vm3 = vmneg %vm156_vm6  ;;  %v4086_v16 = vld [vmem:[#allocation15_spill] sm:$0xff] }
  0x54   :  { %vm1995_vm6 = vmneg %vm162_vm9  ;;  %vm4084_vm9 = vcmp.eq.s32.totalorder %v4083_v14, %v2607_v6  ;;  %v4096_v6 = vld [vmem:[#allocation19_spill] sm:$0xff] }
  0x55   :  { %333 = vadd.xlane.f32.xlu0 %v332_v52  ;;  %vm2001_vm15 = vmneg %vm4084_vm9  ;;  %v4135_v52 = vld [vmem:[#allocation48_spill] sm:$0xff] }
  0x56   :  { %1978 = vmatmul.mubr.msk.f32.gmra.mxu0 %vm1977_vm14, %v2640_v15  ;;  %336 = vadd.xlane.f32.xlu1 %v335_v49  ;;  %v4085_v15 = vld [vmem:[#allocation12_spill] sm:$0xff]  ;;  %vm2003_vm14 = vmneg %vm4088_vm10  ;;  %v4136_v49 = vld [vmem:[#allocation47_spill] sm:$0xff] }
  0x57   :  { %603 = vmatprep.mubr.f32.mxu0 %v2671_v27  ;;  %v4095_v27 = vld [vmem:[#allocation20_spill] sm:$0xff] }
  0x5a   :  { %1980 = vmatmul.mubr.msk.f32.gmra.mxu0 %vm1979_vm13, %v2669_v26  ;;  %v4093_v26 = vld [vmem:[#allocation11_spill] sm:$0xff] }
  0x5b   :  { %608 = vmatprep.mubr.f32.mxu0 %v2663_v24  ;;  %v4092_v24 = vld [vmem:[#allocation17_spill] sm:$0xff] }
  0x5e   :  { %1982 = vmatmul.mubr.msk.f32.gmra.mxu0 %vm1981_vm0, %v2658_v21  ;;  %v4089_v21 = vld [vmem:[#allocation8_spill] sm:$0xff]  ;;  %vm4094_vm0 = vcmp.eq.s32.totalorder %v4093_v26, %v2826_v60 }
  0x5f   :  { %613 = vmatprep.mubr.f32.mxu0 %v2697_v38  ;;  %vm4090_vm13 = vcmp.eq.s32.totalorder %v4089_v21, %v2826_v60  ;;  %v4097_v38 = vld [vmem:[#allocation16_spill] sm:$0xff]  ;;  %v4146_v21 = vld [vmem:[#allocation54_spill] sm:$0xff] }
  0x60   :  { %vm2005_vm11 = vmneg %vm4090_vm13  ;;  %vm4122_vm13 = vcmp.eq.s32.totalorder %v4121_v30, %v2826_v60 }
  0x62   :  { %1984 = vmatmul.mubr.msk.f32.gmra.mxu0 %vm1983_vm12, %v2692_v36  ;;  %vm2007_vm12 = vmneg %vm4094_vm0  ;;  %v787_v36 = vld [vmem:[%s3939_s3 + $0x10] sm:$0xff]  ;;  %vm4126_vm0 = vcmp.eq.s32.totalorder %v4125_v62, %v2826_v60 }
  0x63   :  { %618 = vmatprep.mubr.f32.mxu0 %v2705_v41  ;;  %2249 = vmatprep.subr.mxu0 %v787_v36  ;;  %v4099_v41 = vld [vmem:[#allocation21_spill] sm:$0xff] }
  0x64   :  { %2250 = vmatpush3.msra.mxu0 %v787_v36  ;;  %2424 = vmatprep.subr.mxu1 %v787_v36 }
  0x65   :  { %2428 = vmatpush3.msra.mxu1 %v787_v36 }
  0x66   :  { %1986 = vmatmul.mubr.msk.f32.gmra.mxu0 %vm1985_vm2, %v2703_v40  ;;  %vm4098_vm2 = vcmp.eq.s32.totalorder %v4097_v38, %v2826_v60  ;;  %v786_v40 = vld [vmem:[%s3939_s3 + $0x8] sm:$0xff] }
  0x67   :  { %623 = vmatprep.mubr.f32.mxu0 %v2727_v53  ;;  %2251 = vmatprep.subr.mxu0 %v786_v40  ;;  %v4103_v53 = vld [vmem:[#allocation26_spill] sm:$0xff] }
  0x68   :  { %2425 = vmatprep.subr.mxu1 %v786_v40  ;;  %2252 = vmatpush3.msra.mxu0 %v786_v40 }
  0x69   :  { %2253 = vmatprep.subr.mxu0 %v785_v42  ;;  %2429 = vmatpush3.msra.mxu1 %v786_v40 }
  0x6a   :  { %1988 = vmatmul.mubr.msk.f32.gmra.mxu0 %vm1987_vm1, %v2723_v51  ;;  %vm2009_vm1 = vmneg %vm4098_vm2  ;;  %v4101_v51 = vld [vmem:[#allocation18_spill] sm:$0xff]  ;;  %2426 = vmatprep.subr.mxu1 %v785_v42  ;;  %vm4130_vm2 = vcmp.eq.s32.totalorder %v4129_v48, %v2826_v60 }
  0x6b   :  { %628 = vmatprep.mubr.f32.mxu0 %v2735_v56  ;;  %2254 = vmatpush3.msra.mxu0 %v785_v42  ;;  %v4105_v56 = vld [vmem:[#allocation23_spill] sm:$0xff] }
  0x6c   :  { %2430 = vmatpush3.msra.mxu1 %v785_v42 }
  0x6e   :  { %1990 = vmatmul.mubr.msk.f32.gmra.mxu0 %vm1989_vm3, %v2733_v55  ;;  %vm4102_vm3 = vcmp.eq.s32.totalorder %v4101_v51, %v2826_v60  ;;  %v4104_v55 = vld [vmem:[#allocation24_spill] sm:$0xff] }
  0x6f   :  { %633 = vmatprep.mubr.f32.mxu0 %v2761_v13  ;;  %v4109_v13 = vld [vmem:[#allocation25_spill] sm:$0xff] }
  0x72   :  { %1992 = vmatmul.mubr.msk.f32.gmra.mxu0 %vm1991_vm4, %v2758_v7  ;;  %vm2011_vm4 = vmneg %vm4102_vm3  ;;  %v4108_v7 = vld [vmem:[#allocation28_spill] sm:$0xff]  ;;  %vm4134_vm3 = vcmp.eq.s32.totalorder %v4133_v37, %v2826_v60 }
  0x73   :  { %638 = vmatprep.mubr.f32.mxu0 %v2769_v20  ;;  %v4112_v20 = vld [vmem:[#allocation30_spill] sm:$0xff] }
  0x76   :  { %1994 = vmatmul.mubr.msk.f32.gmra.mxu0 %vm1993_vm5, %v2767_v19  ;;  %vm4106_vm5 = vcmp.eq.s32.totalorder %v4105_v56, %v2826_v60  ;;  %v4111_v19 = vld [vmem:[#allocation32_spill] sm:$0xff] }
  0x77   :  { %643 = vmatprep.mubr.f32.mxu0 %v2796_v39  ;;  %v4115_v39 = vld [vmem:[#allocation33_spill] sm:$0xff] }
  0x7a   :  { %1996 = vmatmul.mubr.msk.f32.gmra.mxu0 %vm1995_vm6, %v2790_v33  ;;  %vm2013_vm6 = vmneg %vm4106_vm5  ;;  %v4113_v33 = vld [vmem:[#allocation29_spill] sm:$0xff]  ;;  %vm4137_vm5 = vcmp.eq.s32.totalorder %v4136_v49, %v2826_v60  ;;  %v783_v49 = vld [vmem:[%s3938_s2 + $0x10] sm:$0xff] }
  0x7b   :  { %648 = vmatprep.mubr.f32.mxu0 %v2804_v46  ;;  %vm4114_vm9 = vcmp.eq.s32.totalorder %v4113_v33, %v2826_v60  ;;  %v4117_v46 = vld [vmem:[#allocation31_spill] sm:$0xff] }
  0x7c   :  { %vm4118_vm10 = vcmp.eq.s32.totalorder %v4117_v46, %v2826_v60 }
  0x7e   :  { %1998 = vmatmul.mubr.msk.f32.gmra.mxu0 %vm1997_vm7, %v2802_v45  ;;  %vm4110_vm7 = vcmp.eq.s32.totalorder %v4109_v13, %v2826_v60  ;;  %v4116_v45 = vld [vmem:[#allocation34_spill] sm:$0xff] }
  0x7f   :  { %653 = vmatprep.mubr.f32.mxu0 %v4079_v8 }
  0x82   :  { %2000 = vmatmul.mubr.msk.f32.gmra.mxu0 %vm1999_vm8, %v4081_v11  ;;  %vm2015_vm8 = vmneg %vm4110_vm7  ;;  %v4140_v11 = vld [vmem:[#allocation49_spill] sm:$0xff] }
  0x83   :  { %658 = vmatprep.mubr.f32.mxu0 %v4082_v12  ;;  %vm4141_vm7 = vcmp.eq.s32.totalorder %v4140_v11, %v2826_v60 }
  0x86   :  { %2002 = vmatmul.mubr.msk.f32.gmra.mxu0 %vm2001_vm15, %v4085_v15  ;;  %vm2017_vm15 = vmneg %vm4114_vm9  ;;  %vm4143_vm9 = vcmp.eq.s32.totalorder %v3085_v58, %v2826_v60  ;;  %v4144_v15 = vld [vmem:[#allocation56_spill] sm:$0xff] }
  0x87   :  { %663 = vmatprep.mubr.f32.mxu0 %v4086_v16 }
  0x8a   :  { %2004 = vmatmul.mubr.msk.f32.gmra.mxu0 %vm2003_vm14, %v4091_v22  ;;  %vm2019_vm14 = vmneg %vm4118_vm10  ;;  %vm4147_vm10 = vcmp.eq.s32.totalorder %v4146_v21, %v2826_v60  ;;  %v4148_v22 = vld [vmem:[#allocation59_spill] sm:$0xff]  ;;  %v784_v60 = vld [vmem:[%s3938_s2 + $0x18] sm:$0xff] }
  0x8b   :  { %2006 = vmatprep.mubr.msk.f32.mxu0 %vm2005_vm11, %v4092_v24  ;;  %vm2021_vm11 = vmneg %vm4122_vm13  ;;  %2303 = vmatprep.subr.mxu1 %v784_v60  ;;  %vm789_vm13 = vcmask 261120  }
  0x8e   :  { %669 = vmatmul.mubr.f32.gmra.mxu0 %v4095_v27 }
  0x8f   :  { %2008 = vmatprep.mubr.msk.f32.mxu0 %vm2007_vm12, %v4096_v6  ;;  %vm2023_vm12 = vmneg %vm4126_vm0 }
  0x92   :  { %674 = vmatmul.mubr.f32.gmra.mxu0 %v4099_v41 }
  0x93   :  { %2010 = vmatprep.mubr.msk.f32.mxu0 %vm2009_vm1, %v4100_v43  ;;  %vm2025_vm1 = vmneg %vm4130_vm2 }
  0x96   :  { %679 = vmatmul.mubr.f32.gmra.mxu0 %v4103_v53 }
  0x97   :  { %2012 = vmatprep.mubr.msk.f32.mxu0 %vm2011_vm4, %v4104_v55  ;;  %vm2027_vm4 = vmneg %vm4134_vm3 }
  0x9a   :  { %684 = vmatmul.mubr.f32.gmra.mxu0 %v4107_v57 }
  0x9b   :  { %2014 = vmatprep.mubr.msk.f32.mxu0 %vm2013_vm6, %v4108_v7  ;;  %vm2029_vm6 = vmneg %vm4137_vm5 }
  0x9e   :  { %689 = vmatmul.mubr.f32.gmra.mxu0 %v4111_v19 }
  0x9f   :  { %2016 = vmatprep.mubr.msk.f32.mxu0 %vm2015_vm8, %v4112_v20  ;;  %vm2031_vm8 = vmneg %vm4141_vm7 }
  0xa2   :  { %694 = vmatmul.mubr.f32.gmra.mxu0 %v4115_v39  ;;  %v3308_v1 = vpop.xlane.xlu0 %339 }
  0xa3   :  { %2018 = vmatprep.mubr.msk.f32.mxu0 %vm2017_vm15, %v4116_v45  ;;  %v3310_v54 = vpop.xlane.xlu1 %345  ;;  %vm2033_vm15 = vmneg %vm4143_vm9  ;;  %v430_v19 = vmax.f32 %v3308_v1, 1e-12 }
  0xa4   :  { %v432_v33 = vmax.f32 %v3310_v54, 1e-12 }
  0xa6   :  { %699 = vmatmul.mubr.f32.gmra.mxu0 %v4119_v59  ;;  %v3317_v3 = vpop.xlane.xlu0 %342 }
  0xa7   :  { %2020 = vmatprep.mubr.msk.f32.mxu0 %vm2019_vm14, %v4120_v29  ;;  %v3319_v34 = vpop.xlane.xlu1 %348  ;;  %vm2035_vm14 = vmneg %vm4147_vm10  ;;  %v431_v20 = vmax.f32 %v3317_v3, 1e-12 }
  0xa8   :  { %v433_v46 = vmax.f32 %v3319_v34, 1e-12 }
  0xaa   :  { %704 = vmatmul.mubr.f32.gmra.mxu0 %v4123_v61  ;;  %v3326_v25 = vpop.xlane.xlu0 %351 }
  0xab   :  { %2022 = vmatprep.mubr.msk.f32.mxu0 %vm2021_vm11, %v4124_v23  ;;  %v3329_v50 = vpop.xlane.xlu1 %354  ;;  %v434_v1 = vmax.f32 %v3326_v25, 1e-12  ;;  %vm1550_vm11 = vcmask 523264  }
  0xae   :  { %709 = vmatmul.mubr.f32.gmra.mxu0 %v4127_v18  ;;  %v3335_v35 = vpop.xlane.xlu0 %357  ;;  %v435_v18 = vmax.f32 %v3329_v50, 1e-12  ;;  %v782_v50 = vld [vmem:[%s3938_s2 + $0x8] sm:$0xff] }
  0xaf   :  { %2024 = vmatprep.mubr.msk.f32.mxu0 %vm2023_vm12, %v4128_v10  ;;  %v3342_v2 = vpop.xlane.xlu1 %360 }
  0xb2   :  { %714 = vmatmul.mubr.f32.gmra.mxu0 %v4131_v28  ;;  %v3345_v0 = vpop.xlane.xlu0 %363 }
  0xb3   :  { %2026 = vmatprep.mubr.msk.f32.mxu0 %vm2025_vm1, %v4132_v4  ;;  %v3352_v8 = vpop.xlane.xlu1 %366  ;;  %v436_v4 = vmax.f32 %v3335_v35, 1e-12  ;;  %v438_v21 = vmax.f32 %v3345_v0, 1e-12 }
  0xb6   :  { %719 = vmatmul.mubr.f32.gmra.mxu0 %v3068_v31  ;;  %v3358_v12 = vpop.xlane.xlu0 %369  ;;  %v4142_v31 = vld [vmem:[#allocation53_spill] sm:$0xff] }
  0xb7   :  { %2028 = vmatprep.mubr.msk.f32.mxu0 %vm2027_vm4, %v4135_v52  ;;  %v3365_v14 = vpop.xlane.xlu1 %372  ;;  %v440_v0 = vmax.f32 %v3358_v12, 1e-12 }
  0xba   :  { %724 = vmatmul.mubr.f32.gmra.mxu0 %v4138_v5  ;;  %v3368_v16 = vpop.xlane.xlu0 %375 }
  0xbb   :  { %2030 = vmatprep.mubr.msk.f32.mxu0 %vm2029_vm6, %v4139_v9  ;;  %v437_v9 = vmax.f32 %v3342_v2, 1e-12 }
  0xbe   :  { %729 = vmatmul.mubr.f32.gmra.mxu0 %v3108_v63  ;;  %v3375_v63 = vpop.xlane.xlu1 %378  ;;  %v3378_v58 = vpop.xlane.xlu0 %381 }
  0xbf   :  { %2032 = vmatprep.mubr.msk.f32.mxu0 %vm2031_vm8, %v4142_v31 }
  0xc2   :  { %734 = vmatmul.mubr.f32.gmra.mxu0 %v4144_v15  ;;  %v3381_v24 = vpop.xlane.xlu1 %384  ;;  %v3383_v26 = vpop.xlane.xlu0 %387  ;;  %v781_v15 = vld [vmem:[%s3938_s2] sm:$0xff] }
  0xc3   :  { %2034 = vmatprep.mubr.msk.f32.mxu0 %vm2033_vm15, %v4145_v17 }
  0xc6   :  { %739 = vmatmul.mubr.f32.gmra.mxu0 %v3147_v32  ;;  %v3385_v27 = vpop.xlane.xlu1 %390  ;;  %v3387_v36 = vpop.xlane.xlu0 %393 }
  0xc7   :  { %2036 = vmatprep.mubr.msk.f32.mxu0 %vm2035_vm14, %v4148_v22 }
  0xca   :  { %744 = vmatmul.mubr.f32.gmra.mxu0 %v3154_v47  ;;  %v3392_v32 = vpop.xlane.xlu1 %396  ;;  %v3394_v6 = vpop.xlane.xlu0 %399 }
  0xce   :  { %v3396_v38 = vpop.xlane.xlu1 %402  ;;  %v3398_v47 = vpop.xlane.xlu0 %405 }
  0xd2   :  { %v3400_v40 = vpop.xlane.xlu1 %408  ;;  %v3402_v41 = vpop.xlane.xlu0 %411 }
  0xd6   :  { %v3404_v42 = vpop.xlane.xlu1 %414  ;;  %v3406_v43 = vpop.xlane.xlu0 %417 }
  0xda   :  { %v3408_v51 = vpop.xlane.xlu1 %420  ;;  %v3410_v53 = vpop.xlane.xlu0 %423 }
  0xde   :  { %v3412_v55 = vpop.xlane.xlu1 %426  ;;  %v334_v56 = vpop.xlane.xlu0 %333 }
  0xdf   :  { %v428_v57 = vmax.f32 %v334_v56, 1e-12 }
  0xe1   :  { %2435 = vrcp.f32 %v428_v57  ;;  %v439_v57 = vmax.f32 %v3352_v8, 1e-12 }
  0xe2   :  { %v337_v7 = vpop.xlane.xlu1 %336 }
  0xe3   :  { %v429_v13 = vmax.f32 %v337_v7, 1e-12 }
  0xe5   :  { %2437 = vrcp.f32 %v429_v13 }
  0xe6   :  { %2439 = vrcp.f32 %v430_v19 }
  0xe7   :  { %2441 = vrcp.f32 %v431_v20 }
  0xe8   :  { %2443 = vrcp.f32 %v432_v33 }
  0xe9   :  { %2445 = vrcp.f32 %v433_v46 }
  0xea   :  { %2447 = vrcp.f32 %v434_v1  ;;  %v442_v1 = vmax.f32 %v3368_v16, 1e-12 }
  0xeb   :  { %2449 = vrcp.f32 %v435_v18 }
  0xec   :  { %2451 = vrcp.f32 %v436_v4 }
  0xed   :  { %2453 = vrcp.f32 %v437_v9 }
  0xee   :  { %v2436_v39 = vpop.eup %2435  ;;  %2455 = vrcp.f32 %v438_v21 }
  0xef   :  { %2457 = vrcp.f32 %v439_v57  ;;  %v449_v57 = vmax.f32 %v3392_v32, 1e-12 }
  0xf0   :  { %2459 = vrcp.f32 %v440_v0 }
  0xf2   :  { %v2438_v29 = vpop.eup %2437 }
  0xf3   :  { %v2440_v3 = vpop.eup %2439 }
  0xf4   :  { %v2442_v34 = vpop.eup %2441 }
  0xf5   :  { %v2444_v25 = vpop.eup %2443 }
  0xf6   :  { %v2446_v35 = vpop.eup %2445 }
  0xf7   :  { %v2448_v2 = vpop.eup %2447 }
  0xf8   :  { %v2450_v13 = vpop.eup %2449 }
 0x10e   :  { %v590_v45 = vpop.f32.mrf.mxu0 }
 0x10f   :  { %v749_v59 = vmul.f32 %v2436_v39, %v590_v45  ;;  %v2452_v39 = vpop.eup %2451 }
 0x110   :  { %v592_v30 = vpop.f32.mrf.mxu0  ;;  %v2454_v8 = vpop.eup %2453 }
 0x111   :  { %2255 = vmatprep.mubr.msk.f32.mxu0 %vm789_vm13, %v749_v59  ;;  %v441_v59 = vmax.f32 %v3365_v14, 1e-12  ;;  %v2456_v12 = vpop.eup %2455 }
 0x112   :  { %v595_v61 = vpop.f32.mrf.mxu0  ;;  %v2458_v14 = vpop.eup %2457 }
 0x113   :  { %v750_v23 = vmul.f32 %v2438_v29, %v595_v61  ;;  %2461 = vrcp.f32 %v441_v59  ;;  %v2460_v16 = vpop.eup %2459 }
 0x114   :  { %v597_v62 = vpop.f32.mrf.mxu0  ;;  %2463 = vrcp.f32 %v442_v1 }
 0x115   :  { %2256 = vmatmul.mubr.msk.f32.vlgmr.msra.gmra.mxu0 %vm789_vm13, %v750_v23 }
 0x116   :  { %v600_v54 = vpop.f32.mrf.mxu0 }
 0x117   :  { %v751_v10 = vmul.f32 %v2440_v3, %v600_v54  ;;  %v443_v54 = vmax.f32 %v3375_v63, 1e-12 }
 0x118   :  { %v602_v48 = vpop.f32.mrf.mxu0 }
 0x119   :  { %2258 = vmatprep.mubr.msk.f32.mxu1 %vm789_vm13, %v751_v10  ;;  %2465 = vrcp.f32 %v443_v54  ;;  %v444_v48 = vmax.f32 %v3378_v58, 1e-12  ;;  %v454_v54 = vmax.f32 %v3402_v41, 1e-12 }
 0x11a   :  { %v605_v28 = vpop.f32.mrf.mxu0 }
 0x11b   :  { %v752_v37 = vmul.f32 %v2442_v34, %v605_v28  ;;  %2467 = vrcp.f32 %v444_v48 }
 0x11c   :  { %v607_v52 = vpop.f32.mrf.mxu0 }
 0x11d   :  { %2259 = vmatmul.mubr.msk.f32.vlgmr.msra.gmra.mxu1 %vm789_vm13, %v752_v37 }
 0x11e   :  { %v610_v5 = vpop.f32.mrf.mxu0  ;;  %2304 = vmatpush3.msra.mxu1 %v784_v60 }
 0x11f   :  { %v753_v11 = vmul.f32 %v2444_v25, %v610_v5  ;;  %2305 = vmatprep.subr.mxu1 %v783_v49  ;;  %v445_v25 = vmax.f32 %v3381_v24, 1e-12 }
 0x120   :  { %v612_v31 = vpop.f32.mrf.mxu0  ;;  %2306 = vmatpush3.msra.mxu1 %v783_v49  ;;  %v2462_v63 = vpop.eup %2461 }
 0x121   :  { %2261 = vmatprep.mubr.msk.f32.mxu1 %vm789_vm13, %v753_v11  ;;  %2307 = vmatprep.subr.mxu1 %v782_v50  ;;  %2469 = vrcp.f32 %v445_v25  ;;  %v2464_v58 = vpop.eup %2463  ;;  %v447_v31 = vmax.f32 %v3385_v27, 1e-12 }
 0x122   :  { %v615_v17 = vpop.f32.mrf.mxu0  ;;  %2308 = vmatpush3.msra.mxu1 %v782_v50  ;;  %v446_v50 = vmax.f32 %v3383_v26, 1e-12 }
 0x123   :  { %v754_v22 = vmul.f32 %v2446_v35, %v615_v17  ;;  %2309 = vmatprep.subr.mxu1 %v781_v15 }
 0x124   :  { %v617_v60 = vpop.f32.mrf.mxu0  ;;  %2310 = vmatpush3.msra.mxu1 %v781_v15  ;;  %2471 = vrcp.f32 %v446_v50 }
 0x125   :  { %2262 = vmatmul.mubr.msk.f32.gmra.mxu1 %vm789_vm13, %v754_v22  ;;  %2473 = vrcp.f32 %v447_v31  ;;  %v448_v22 = vmax.f32 %v3387_v36, 1e-12  ;;  %v459_v31 = vmax.f32 %v3412_v55, 1e-12 }
 0x126   :  { %v620_v56 = vpop.f32.mrf.mxu0  ;;  %v2466_v24 = vpop.eup %2465 }
 0x127   :  { %v755_v7 = vmul.f32 %v2448_v2, %v620_v56  ;;  %2475 = vrcp.f32 %v448_v22 }
 0x128   :  { %v622_v19 = vpop.f32.mrf.mxu0  ;;  %v2468_v26 = vpop.eup %2467  ;;  %2477 = vrcp.f32 %v449_v57 }
 0x129   :  { %2264 = vmatprep.mubr.msk.f32.mxu1 %vm789_vm13, %v755_v7 }
 0x12a   :  { %v625_v20 = vpop.f32.mrf.mxu0 }
 0x12b   :  { %v756_v33 = vmul.f32 %v2450_v13, %v625_v20  ;;  %v450_v20 = vmax.f32 %v3394_v6, 1e-12 }
 0x12c   :  { %v627_v45 = vpop.f32.mrf.mxu0 }
 0x12d   :  { %2265 = vmatmul.mubr.msk.f32.gmra.mxu1 %vm789_vm13, %v756_v33  ;;  %2479 = vrcp.f32 %v450_v20  ;;  %v451_v45 = vmax.f32 %v3396_v38, 1e-12 }
 0x12e   :  { %v630_v46 = vpop.f32.mrf.mxu0  ;;  %v2470_v27 = vpop.eup %2469 }
 0x12f   :  { %v757_v29 = vmul.f32 %v2452_v39, %v630_v46  ;;  %2481 = vrcp.f32 %v451_v45  ;;  %v2499_v45 = vld [vmem:[%s3937_s1] sm:$0xff] }
 0x130   :  { %v632_v30 = vpop.f32.mrf.mxu0 }
 0x131   :  { %2267 = vmatprep.mubr.msk.f32.mxu1 %vm789_vm13, %v757_v29  ;;  %v2472_v36 = vpop.eup %2471 }
 0x132   :  { %v635_v61 = vpop.f32.mrf.mxu0  ;;  %v2474_v32 = vpop.eup %2473 }
 0x133   :  { %v758_v23 = vmul.f32 %v2454_v8, %v635_v61  ;;  %v452_v8 = vmax.f32 %v3398_v47, 1e-12 }
 0x134   :  { %v637_v3 = vpop.f32.mrf.mxu0  ;;  %v2476_v6 = vpop.eup %2475 }
 0x135   :  { %2268 = vmatmul.mubr.msk.f32.gmra.mxu1 %vm789_vm13, %v758_v23  ;;  %2483 = vrcp.f32 %v452_v8  ;;  %v453_v23 = vmax.f32 %v3400_v40, 1e-12  ;;  %v2478_v38 = vpop.eup %2477  ;;  %v1542_v8 = vld [vmem:[%s3941_s5 + $0x38] sm:$0xff] }
 0x136   :  { %v640_v62 = vpop.f32.mrf.mxu0  ;;  %2359 = vmatprep.subr.mxu1 %v1542_v8 }
 0x137   :  { %v759_v18 = vmul.f32 %v2456_v12, %v640_v62  ;;  %2485 = vrcp.f32 %v453_v23  ;;  %v1541_v23 = vld [vmem:[%s3941_s5 + $0x30] sm:$0xff] }
 0x138   :  { %v642_v10 = vpop.f32.mrf.mxu0  ;;  %2487 = vrcp.f32 %v454_v54  ;;  %v1540_v54 = vld [vmem:[%s3941_s5 + $0x28] sm:$0xff] }
 0x139   :  { %2270 = vmatprep.mubr.msk.f32.mxu1 %vm789_vm13, %v759_v18 }
 0x13a   :  { %v645_v34 = vpop.f32.mrf.mxu0  ;;  %v2480_v47 = vpop.eup %2479 }
 0x13b   :  { %v760_v28 = vmul.f32 %v2458_v14, %v645_v34  ;;  %v455_v34 = vmax.f32 %v3404_v42, 1e-12 }
 0x13c   :  { %v647_v4 = vpop.f32.mrf.mxu0  ;;  %v2482_v40 = vpop.eup %2481 }
 0x13d   :  { %2271 = vmatmul.mubr.msk.f32.gmra.mxu1 %vm789_vm13, %v760_v28  ;;  %2489 = vrcp.f32 %v455_v34  ;;  %v456_v4 = vmax.f32 %v3406_v43, 1e-12  ;;  %v4149_v34 = vld [vmem:[#allocation60_spill] sm:$0xff] }
 0x13e   :  { %v650_v37 = vpop.f32.mrf.mxu0 }
 0x13f   :  { %v761_v52 = vmul.f32 %v2460_v16, %v650_v37  ;;  %2491 = vrcp.f32 %v456_v4  ;;  %v2516_v4 = vld [vmem:[%s3937_s1 + $0xb0] sm:$0xff] }
 0x140   :  { %v652_v49 = vpop.f32.mrf.mxu0 }
 0x141   :  { %2273 = vmatprep.mubr.msk.f32.mxu1 %vm789_vm13, %v761_v52 }
 0x142   :  { %v655_v5 = vpop.f32.mrf.mxu0  ;;  %v2484_v41 = vpop.eup %2483 }
 0x143   :  { %v762_v9 = vmul.f32 %v2462_v63, %v655_v5  ;;  %v457_v63 = vmax.f32 %v3408_v51, 1e-12 }
 0x144   :  { %v657_v11 = vpop.f32.mrf.mxu0  ;;  %v2486_v42 = vpop.eup %2485 }
 0x145   :  { %2274 = vmatmul.mubr.msk.f32.gmra.mxu1 %vm789_vm13, %v762_v9  ;;  %2493 = vrcp.f32 %v457_v63  ;;  %v458_v9 = vmax.f32 %v3410_v53, 1e-12  ;;  %v2488_v43 = vpop.eup %2487  ;;  %v2520_v63 = vld [vmem:[%s3937_s1 + $0xd0] sm:$0xff] }
 0x146   :  { %v660_v35 = vpop.f32.mrf.mxu0 }
 0x147   :  { %v763_v15 = vmul.f32 %v2464_v58, %v660_v35  ;;  %2495 = vrcp.f32 %v458_v9  ;;  %v2524_v9 = vld [vmem:[%s3937_s1 + $0xf0] sm:$0xff] }
 0x148   :  { %v662_v17 = vpop.f32.mrf.mxu0  ;;  %2497 = vrcp.f32 %v459_v31 }
 0x149   :  { %2276 = vmatprep.mubr.msk.f32.mxu1 %vm789_vm13, %v763_v15 }
 0x14a   :  { %v665_v21 = vpop.f32.mrf.mxu0  ;;  %v2490_v51 = vpop.eup %2489 }
 0x14b   :  { %v764_v2 = vmul.f32 %v2466_v24, %v665_v21 }
 0x14c   :  { %v667_v60 = vpop.f32.mrf.mxu0  ;;  %v2492_v22 = vpop.eup %2491 }
 0x14d   :  { %2277 = vmatmul.mubr.msk.f32.gmra.mxu1 %vm789_vm13, %v764_v2 }
 0x14e   :  { %v670_v56 = vpop.f32.mrf.mxu0 }
 0x14f   :  { %v765_v7 = vmul.f32 %v2468_v26, %v670_v56 }
 0x150   :  { %v672_v13 = vpop.f32.mrf.mxu0 }
 0x151   :  { %2279 = vmatprep.mubr.msk.f32.mxu1 %vm789_vm13, %v765_v7 }
 0x152   :  { %v675_v19 = vpop.f32.mrf.mxu0  ;;  %v2494_v60 = vpop.eup %2493 }
 0x153   :  { %v766_v0 = vmul.f32 %v2470_v27, %v675_v19 }
 0x154   :  { %v677_v33 = vpop.f32.mrf.mxu0  ;;  %v2496_v7 = vpop.eup %2495 }
 0x155   :  { %2280 = vmatmul.mubr.msk.f32.gmra.mxu1 %vm789_vm13, %v766_v0  ;;  %v2498_v20 = vpop.eup %2497 }
 0x156   :  { %v680_v39 = vpop.f32.mrf.mxu0 }
 0x157   :  { %v767_v46 = vmul.f32 %v2472_v36, %v680_v39 }
 0x158   :  { %v682_v59 = vpop.f32.mrf.mxu0 }
 0x159   :  { %2282 = vmatprep.mubr.msk.f32.mxu1 %vm789_vm13, %v767_v46  ;;  %v2500_v46 = vld [vmem:[%s3937_s1 + $0x8] sm:$0xff]  ;;  %v2502_v59 = vld [vmem:[%s3937_s1 + $0x18] sm:$0xff] }
 0x15a   :  { %v685_v29 = vpop.f32.mrf.mxu0 }
 0x15b   :  { %v768_v30 = vmul.f32 %v2474_v32, %v685_v29  ;;  %v2501_v32 = vld [vmem:[%s3937_s1 + $0x10] sm:$0xff]  ;;  %v2503_v29 = vld [vmem:[%s3937_s1 + $0x20] sm:$0xff] }
 0x15c   :  { %v687_v61 = vpop.f32.mrf.mxu0 }
 0x15d   :  { %2283 = vmatmul.mubr.msk.f32.gmra.mxu1 %vm789_vm13, %v768_v30  ;;  %v2504_v30 = vld [vmem:[%s3937_s1 + $0x28] sm:$0xff]  ;;  %v2506_v61 = vld [vmem:[%s3937_s1 + $0x38] sm:$0xff] }
 0x15e   :  { %v690_v1 = vpop.f32.mrf.mxu0 }
 0x15f   :  { %v769_v12 = vmul.f32 %v2476_v6, %v690_v1  ;;  %v2505_v6 = vld [vmem:[%s3937_s1 + $0x30] sm:$0xff]  ;;  %v2507_v1 = vld [vmem:[%s3937_s1 + $0x40] sm:$0xff] }
 0x160   :  { %v692_v3 = vpop.f32.mrf.mxu0 }
 0x161   :  { %2285 = vmatprep.mubr.msk.f32.mxu1 %vm789_vm13, %v769_v12  ;;  %v2508_v12 = vld [vmem:[%s3937_s1 + $0x48] sm:$0xff]  ;;  %v2510_v3 = vld [vmem:[%s3937_s1 + $0x58] sm:$0xff] }
 0x162   :  { %v695_v62 = vpop.f32.mrf.mxu0 }
 0x163   :  { %v770_v18 = vmul.f32 %v2478_v38, %v695_v62  ;;  %v2509_v38 = vld [vmem:[%s3937_s1 + $0x50] sm:$0xff]  ;;  %v2511_v62 = vld [vmem:[%s3937_s1 + $0x60] sm:$0xff] }
 0x164   :  { %v697_v14 = vpop.f32.mrf.mxu0 }
 0x165   :  { %2286 = vmatmul.mubr.msk.f32.gmra.mxu1 %vm789_vm13, %v770_v18  ;;  %v2512_v18 = vld [vmem:[%s3937_s1 + $0x68] sm:$0xff]  ;;  %v2514_v14 = vld [vmem:[%s3937_s1 + $0x78] sm:$0xff] }
 0x166   :  { %v700_v10 = vpop.f32.mrf.mxu0 }
 0x167   :  { %v771_v48 = vmul.f32 %v2480_v47, %v700_v10  ;;  %v2513_v47 = vld [vmem:[%s3937_s1 + $0x70] sm:$0xff]  ;;  %v1539_v10 = vld [vmem:[%s3941_s5 + $0x20] sm:$0xff] }
 0x168   :  { %v702_v28 = vpop.f32.mrf.mxu0 }
 0x169   :  { %2288 = vmatprep.mubr.msk.f32.mxu1 %vm789_vm13, %v771_v48  ;;  %v4150_v48 = vld [vmem:[#allocation58_spill] sm:$0xff]  ;;  %v4152_v28 = vld [vmem:[#allocation52_spill] sm:$0xff] }
 0x16a   :  { %v705_v16 = vpop.f32.mrf.mxu0 }
 0x16b   :  { %v772_v37 = vmul.f32 %v2482_v40, %v705_v16  ;;  %v4151_v40 = vld [vmem:[#allocation55_spill] sm:$0xff]  ;;  %v2515_v16 = vld [vmem:[%s3937_s1 + $0xa8] sm:$0xff] }
 0x16c   :  { %v707_v25 = vpop.f32.mrf.mxu0 }
 0x16d   :  { %2289 = vmatmul.mubr.msk.f32.gmra.mxu1 %vm789_vm13, %v772_v37  ;;  %v2517_v37 = vld [vmem:[%s3937_s1 + $0xb8] sm:$0xff]  ;;  %v1537_v25 = vld [vmem:[%s3941_s5 + $0x10] sm:$0xff] }
 0x16e   :  { %v710_v52 = vpop.f32.mrf.mxu0 }
 0x16f   :  { %v773_v49 = vmul.f32 %v2484_v41, %v710_v52  ;;  %v2518_v41 = vld [vmem:[%s3937_s1 + $0xc0] sm:$0xff]  ;;  %v2519_v52 = vld [vmem:[%s3937_s1 + $0xc8] sm:$0xff] }
 0x170   :  { %v712_v5 = vpop.f32.mrf.mxu0 }
 0x171   :  { %2291 = vmatprep.mubr.msk.f32.mxu1 %vm789_vm13, %v773_v49  ;;  %v2521_v49 = vld [vmem:[%s3937_s1 + $0xd8] sm:$0xff]  ;;  %v1536_v5 = vld [vmem:[%s3941_s5 + $0x8] sm:$0xff] }
 0x172   :  { %v715_v50 = vpop.f32.mrf.mxu0 }
 0x173   :  { %v774_v58 = vmul.f32 %v2486_v42, %v715_v50  ;;  %v2522_v42 = vld [vmem:[%s3937_s1 + $0xe0] sm:$0xff]  ;;  %v2523_v50 = vld [vmem:[%s3937_s1 + $0xe8] sm:$0xff] }
 0x174   :  { %v717_v11 = vpop.f32.mrf.mxu0 }
 0x175   :  { %2292 = vmatmul.mubr.msk.f32.gmra.mxu1 %vm789_vm13, %v774_v58  ;;  %v2525_v58 = vld [vmem:[%s3937_s1 + $0xf8] sm:$0xff] }
 0x176   :  { %v720_v35 = vpop.f32.mrf.mxu0 }
 0x177   :  { %v775_v15 = vmul.f32 %v2488_v43, %v720_v35  ;;  %v1535_v43 = vld [vmem:[%s3941_s5] sm:$0xff] }
 0x178   :  { %v722_v24 = vpop.f32.mrf.mxu0 }
 0x179   :  { %2294 = vmatprep.mubr.msk.f32.mxu1 %vm789_vm13, %v775_v15 }
 0x17a   :  { %v725_v17 = vpop.f32.mrf.mxu0 }
 0x17b   :  { %v776_v21 = vmul.f32 %v2490_v51, %v725_v17 }
 0x17c   :  { %v727_v2 = vpop.f32.mrf.mxu0 }
 0x17d   :  { %2295 = vmatmul.mubr.msk.f32.gmra.mxu1 %vm789_vm13, %v776_v21 }
 0x17e   :  { %v730_v53 = vpop.f32.mrf.mxu0 }
 0x17f   :  { %v777_v26 = vmul.f32 %v2492_v22, %v730_v53 }
 0x180   :  { %v732_v56 = vpop.f32.mrf.mxu0 }
 0x181   :  { %2297 = vmatprep.mubr.msk.f32.mxu1 %vm789_vm13, %v777_v26 }
 0x182   :  { %v735_v57 = vpop.f32.mrf.mxu0 }
 0x183   :  { %v778_v55 = vmul.f32 %v2494_v60, %v735_v57 }
 0x184   :  { %v737_v27 = vpop.f32.mrf.mxu0 }
 0x185   :  { %2298 = vmatmul.mubr.msk.f32.gmra.mxu1 %vm789_vm13, %v778_v55 }
 0x186   :  { %v740_v13 = vpop.f32.mrf.mxu0 }
 0x187   :  { %v779_v19 = vmul.f32 %v2496_v7, %v740_v13 }
 0x188   :  { %v742_v0 = vpop.f32.mrf.mxu0 }
 0x189   :  { %2300 = vmatprep.mubr.msk.f32.mxu1 %vm789_vm13, %v779_v19 }
 0x18a   :  { %v745_v36 = vpop.f32.mrf.mxu0 }
 0x18b   :  { %v780_v33 = vmul.f32 %v2498_v20, %v745_v36 }
 0x18c   :  { %v747_v39 = vpop.f32.mrf.mxu0 }
 0x18d   :  { %2301 = vmatmul.mubr.msk.f32.gmra.mxu1 %vm789_vm13, %v780_v33 }
 0x18e   :  { %2311 = vmatprep.mubr.msk.f32.mxu1 %vm789_vm13, %v2499_v45 }
 0x191   :  { %2312 = vmatmul.mubr.msk.f32.vlgmr.msra.gmra.mxu1 %vm789_vm13, %v2500_v46 }
 0x192   :  { %2314 = vmatprep.mubr.msk.f32.mxu1 %vm789_vm13, %v2501_v32  ;;  %2360 = vmatpush3.msra.mxu1 %v1542_v8 }
 0x193   :  { %2361 = vmatprep.subr.mxu1 %v1541_v23 }
 0x194   :  { %2362 = vmatpush3.msra.mxu1 %v1541_v23 }
 0x195   :  { %2315 = vmatmul.mubr.msk.f32.gmra.mxu1 %vm789_vm13, %v2502_v59  ;;  %2363 = vmatprep.subr.mxu1 %v1540_v54 }
 0x196   :  { %2317 = vmatprep.mubr.msk.f32.mxu1 %vm789_vm13, %v2503_v29  ;;  %2364 = vmatpush3.msra.mxu1 %v1540_v54 }
 0x197   :  { %2365 = vmatprep.subr.mxu1 %v1539_v10 }
 0x198   :  { %2366 = vmatpush3.msra.mxu1 %v1539_v10 }
 0x199   :  { %2318 = vmatmul.mubr.msk.f32.gmra.mxu1 %vm789_vm13, %v2504_v30 }
 0x19a   :  { %2320 = vmatprep.mubr.msk.f32.mxu1 %vm789_vm13, %v2505_v6  ;;  %v3680_v6 = vld [vmem:[%s3940_s4] ss:$0 sm:$0xff] }
 0x19d   :  { %2321 = vmatmul.mubr.msk.f32.gmra.mxu1 %vm789_vm13, %v2506_v61 }
 0x19e   :  { %2323 = vmatprep.mubr.msk.f32.mxu1 %vm789_vm13, %v2507_v1 }
 0x1a1   :  { %2324 = vmatmul.mubr.msk.f32.gmra.mxu1 %vm789_vm13, %v2508_v12 }
 0x1a2   :  { %2326 = vmatprep.mubr.msk.f32.mxu1 %vm789_vm13, %v2509_v38 }
 0x1a5   :  { %2327 = vmatmul.mubr.msk.f32.gmra.mxu1 %vm789_vm13, %v2510_v3 }
 0x1a6   :  { %2329 = vmatprep.mubr.msk.f32.mxu1 %vm789_vm13, %v2511_v62 }
 0x1a9   :  { %2330 = vmatmul.mubr.msk.f32.gmra.mxu1 %vm789_vm13, %v2512_v18 }
 0x1aa   :  { %2332 = vmatprep.mubr.msk.f32.mxu1 %vm789_vm13, %v2513_v47 }
 0x1ad   :  { %2333 = vmatmul.mubr.msk.f32.gmra.mxu1 %vm789_vm13, %v2514_v14 }
 0x1ae   :  { %2335 = vmatprep.mubr.msk.f32.mxu1 %vm789_vm13, %v3164_v44  ;;  %v1538_v44 = vld [vmem:[%s3941_s5 + $0x18] sm:$0xff] }
 0x1af   :  { %2367 = vmatprep.subr.mxu1 %v1538_v44 }
 0x1b0   :  { %2368 = vmatpush3.msra.mxu1 %v1538_v44 }
 0x1b1   :  { %2336 = vmatmul.mubr.msk.f32.gmra.mxu1 %vm789_vm13, %v4149_v34  ;;  %2369 = vmatprep.subr.mxu1 %v1537_v25 }
 0x1b2   :  { %2338 = vmatprep.mubr.msk.f32.mxu1 %vm789_vm13, %v4150_v48  ;;  %2370 = vmatpush3.msra.mxu1 %v1537_v25 }
 0x1b3   :  { %2371 = vmatprep.subr.mxu1 %v1536_v5 }
 0x1b4   :  { %2372 = vmatpush3.msra.mxu1 %v1536_v5 }
 0x1b5   :  { %2339 = vmatmul.mubr.msk.f32.gmra.mxu1 %vm789_vm13, %v4151_v40  ;;  %2373 = vmatprep.subr.mxu1 %v1535_v43 }
 0x1b6   :  { %2341 = vmatprep.mubr.msk.f32.mxu1 %vm789_vm13, %v4152_v28  ;;  %2374 = vmatpush3.msra.mxu1 %v1535_v43 }
 0x1b9   :  { %2342 = vmatmul.mubr.msk.f32.gmra.mxu1 %vm789_vm13, %v2515_v16 }
 0x1ba   :  { %2344 = vmatprep.mubr.msk.f32.mxu1 %vm789_vm13, %v2516_v4 }
 0x1bd   :  { %2345 = vmatmul.mubr.msk.f32.gmra.mxu1 %vm789_vm13, %v2517_v37 }
 0x1be   :  { %2347 = vmatprep.mubr.msk.f32.mxu1 %vm789_vm13, %v2518_v41 }
 0x1c1   :  { %2348 = vmatmul.mubr.msk.f32.gmra.mxu1 %vm789_vm13, %v2519_v52 }
 0x1c2   :  { %2350 = vmatprep.mubr.msk.f32.mxu1 %vm789_vm13, %v2520_v63 }
 0x1c5   :  { %2351 = vmatmul.mubr.msk.f32.gmra.mxu1 %vm789_vm13, %v2521_v49 }
 0x1c6   :  { %2353 = vmatprep.mubr.msk.f32.mxu1 %vm789_vm13, %v2522_v42 }
 0x1c9   :  { %2354 = vmatmul.mubr.msk.f32.gmra.mxu1 %vm789_vm13, %v2523_v50 }
 0x1ca   :  { %2356 = vmatprep.mubr.msk.f32.mxu1 %vm789_vm13, %v2524_v9 }
 0x1cd   :  { %2357 = vmatmul.mubr.msk.f32.gmra.mxu1 %vm789_vm13, %v2525_v58 }
 0x1d5   :  { %v2257_v29 = vpop.f32.mrf.mxu0 }
 0x1d7   :  { %v952_v1 = vpop.f32.mrf.mxu0 }
 0x1dd   :  { %v2260_v11 = vpop.f32.mrf.mxu1 }
 0x1df   :  { %v962_v35 = vpop.f32.mrf.mxu1 }
 0x1e5   :  { %v2263_v31 = vpop.f32.mrf.mxu1 }
 0x1e7   :  { %v972_v15 = vpop.f32.mrf.mxu1 }
 0x1ed   :  { %v2266_v51 = vpop.f32.mrf.mxu1 }
 0x1ef   :  { %v3627_v24 = vpop.f32.mrf.mxu1 }
 0x1f5   :  { %v3629_v17 = vpop.f32.mrf.mxu1 }
 0x1f7   :  { %v3631_v21 = vpop.f32.mrf.mxu1 }
 0x1fd   :  { %v3633_v22 = vpop.f32.mrf.mxu1 }
 0x1ff   :  { %v3635_v2 = vpop.f32.mrf.mxu1 }
 0x205   :  { %v3637_v53 = vpop.f32.mrf.mxu1 }
 0x207   :  { %v3639_v26 = vpop.f32.mrf.mxu1 }
 0x20d   :  { %v3641_v60 = vpop.f32.mrf.mxu1 }
 0x20f   :  { %v3643_v56 = vpop.f32.mrf.mxu1 }
 0x215   :  { %v3645_v57 = vpop.f32.mrf.mxu1 }
 0x217   :  { %v3647_v55 = vpop.f32.mrf.mxu1 }
 0x21d   :  { %v3649_v7 = vpop.f32.mrf.mxu1 }
 0x21f   :  { %v3651_v27 = vpop.f32.mrf.mxu1 }
 0x225   :  { %v3653_v13 = vpop.f32.mrf.mxu1 }
 0x227   :  { %v3655_v19 = vpop.f32.mrf.mxu1 }
 0x22d   :  { %v3657_v20 = vpop.f32.mrf.mxu1 }
 0x22f   :  { %v3659_v0 = vpop.f32.mrf.mxu1 }
 0x235   :  { %v3661_v36 = vpop.f32.mrf.mxu1 }
 0x237   :  { %v3663_v33 = vpop.f32.mrf.mxu1 }
 0x23d   :  { %v3665_v39 = vpop.f32.mrf.mxu1 }
 0x23f   :  { %v3667_v45 = vpop.f32.mrf.mxu1 }
 0x245   :  { %v3669_v46 = vpop.f32.mrf.mxu1 }
 0x247   :  { %v3671_v32 = vpop.f32.mrf.mxu1 }
 0x24d   :  { %v3673_v59 = vpop.f32.mrf.mxu1 }
 0x24f   :  { %v3675_v8 = vpop.f32.mrf.mxu1 }
 0x251   :  { %v2313_v30 = vpop.f32.mrf.mxu1 }
 0x252   :  { %v1279_v61 = vadd.f32 %v2313_v30, %v2257_v29 }
 0x253   :  { %v1273_v23 = vpop.f32.mrf.mxu1 }
 0x254   :  { %v1440_v12 = vadd.f32 %v3680_v6, %v1279_v61  ;;  %v1274_v38 = vadd.f32 %v1273_v23, %v952_v1 }
 0x255   :  { %v2316_v3 = vpop.f32.mrf.mxu1 }
 0x256   :  { %v1439_v62 = vadd.f32 %v3680_v6, %v1274_v38  ;;  %v1289_v54 = vadd.f32 %v2316_v3, %v2260_v11  ;;  %v1472_v18 = vmul.f32 0.01, %v1440_v12 }
 0x257   :  { %v1283_v47 = vpop.f32.mrf.mxu1 }
 0x258   :  { %v1471_v14 = vmul.f32 0.01, %v1439_v62  ;;  %v1442_v10 = vadd.f32 %v3680_v6, %v1289_v54  ;;  %v1284_v34 = vadd.f32 %v1283_v47, %v962_v35  ;;  %v1504_v16 = vmax.f32 %v1440_v12, %v1472_v18 }
 0x259   :  { %v2319_v48 = vpop.f32.mrf.mxu1 }
 0x25a   :  { %v1503_v40 = vmax.f32 %v1439_v62, %v1471_v14  ;;  %v1441_v28 = vadd.f32 %v3680_v6, %v1284_v34  ;;  %v1299_v44 = vadd.f32 %v2319_v48, %v2263_v31  ;;  %v1474_v4 = vmul.f32 0.01, %v1442_v10 }
 0x25b   :  { %v1293_v37 = vpop.f32.mrf.mxu1 }
 0x25c   :  { %v1473_v41 = vmul.f32 0.01, %v1441_v28  ;;  %v1444_v25 = vadd.f32 %v3680_v6, %v1299_v44  ;;  %v1294_v52 = vadd.f32 %v1293_v37, %v972_v15  ;;  %2375 = vmatprep.mubr.msk.f32.mxu1 %vm1550_vm11, %v1503_v40  ;;  %v1506_v50 = vmax.f32 %v1442_v10, %v1474_v4 }
 0x25d   :  { %v2322_v63 = vpop.f32.mrf.mxu1  ;;  %2376 = vmatmul.mubr.msk.f32.vlgmr.msra.gmra.mxu1 %vm1550_vm11, %v1504_v16 }
 0x25e   :  { %v1505_v49 = vmax.f32 %v1441_v28, %v1473_v41  ;;  %v1443_v42 = vadd.f32 %v3680_v6, %v1294_v52  ;;  %v1309_v5 = vadd.f32 %v2322_v63, %v2266_v51  ;;  %v1476_v9 = vmul.f32 0.01, %v1444_v25 }
 0x25f   :  { %v1303_v58 = vpop.f32.mrf.mxu1 }
 0x260   :  { %v1475_v43 = vmul.f32 0.01, %v1443_v42  ;;  %v1446_v11 = vadd.f32 %v3680_v6, %v1309_v5  ;;  %v1304_v35 = vadd.f32 %v1303_v58, %v3627_v24  ;;  %2378 = vmatprep.mubr.msk.f32.mxu1 %vm1550_vm11, %v1505_v49  ;;  %v1508_v61 = vmax.f32 %v1444_v25, %v1476_v9 }
 0x261   :  { %v2325_v31 = vpop.f32.mrf.mxu1  ;;  %2379 = vmatmul.mubr.msk.f32.gmra.mxu1 %vm1550_vm11, %v1506_v50 }
 0x262   :  { %v1507_v15 = vmax.f32 %v1443_v42, %v1475_v43  ;;  %v1445_v29 = vadd.f32 %v3680_v6, %v1304_v35  ;;  %v1319_v30 = vadd.f32 %v2325_v31, %v3629_v17  ;;  %v1478_v51 = vmul.f32 0.01, %v1446_v11 }
 0x263   :  { %v1313_v1 = vpop.f32.mrf.mxu1 }
 0x264   :  { %v1477_v23 = vmul.f32 0.01, %v1445_v29  ;;  %v1448_v12 = vadd.f32 %v3680_v6, %v1319_v30  ;;  %v1314_v38 = vadd.f32 %v1313_v1, %v3631_v21  ;;  %2381 = vmatprep.mubr.msk.f32.mxu1 %vm1550_vm11, %v1507_v15  ;;  %v1510_v18 = vmax.f32 %v1446_v11, %v1478_v51 }
 0x265   :  { %v2328_v24 = vpop.f32.mrf.mxu1  ;;  %2382 = vmatmul.mubr.msk.f32.gmra.mxu1 %vm1550_vm11, %v1508_v61 }
 0x266   :  { %v1509_v3 = vmax.f32 %v1445_v29, %v1477_v23  ;;  %v1447_v62 = vadd.f32 %v3680_v6, %v1314_v38  ;;  %v1329_v54 = vadd.f32 %v2328_v24, %v3633_v22  ;;  %v1480_v17 = vmul.f32 0.01, %v1448_v12 }
 0x267   :  { %v1323_v47 = vpop.f32.mrf.mxu1 }
 0x268   :  { %v1479_v14 = vmul.f32 0.01, %v1447_v62  ;;  %v1450_v10 = vadd.f32 %v3680_v6, %v1329_v54  ;;  %v1324_v34 = vadd.f32 %v1323_v47, %v3635_v2  ;;  %2384 = vmatprep.mubr.msk.f32.mxu1 %vm1550_vm11, %v1509_v3  ;;  %v1512_v44 = vmax.f32 %v1448_v12, %v1480_v17 }
 0x269   :  { %v2331_v21 = vpop.f32.mrf.mxu1  ;;  %2385 = vmatmul.mubr.msk.f32.gmra.mxu1 %vm1550_vm11, %v1510_v18 }
 0x26a   :  { %v1511_v48 = vmax.f32 %v1447_v62, %v1479_v14  ;;  %v1449_v40 = vadd.f32 %v3680_v6, %v1324_v34  ;;  %v1339_v28 = vadd.f32 %v2331_v21, %v3637_v53  ;;  %v1482_v22 = vmul.f32 0.01, %v1450_v10 }
 0x26b   :  { %v1333_v16 = vpop.f32.mrf.mxu1 }
 0x26c   :  { %v1481_v4 = vmul.f32 0.01, %v1449_v40  ;;  %v1452_v37 = vadd.f32 %v3680_v6, %v1339_v28  ;;  %v1334_v41 = vadd.f32 %v1333_v16, %v3639_v26  ;;  %2387 = vmatprep.mubr.msk.f32.mxu1 %vm1550_vm11, %v1511_v48  ;;  %v1514_v49 = vmax.f32 %v1450_v10, %v1482_v22 }
 0x26d   :  { %v2334_v2 = vpop.f32.mrf.mxu1  ;;  %2388 = vmatmul.mubr.msk.f32.gmra.mxu1 %vm1550_vm11, %v1512_v44 }
 0x26e   :  { %v1513_v25 = vmax.f32 %v1449_v40, %v1481_v4  ;;  %v1451_v52 = vadd.f32 %v3680_v6, %v1334_v41  ;;  %v1349_v63 = vadd.f32 %v2334_v2, %v3641_v60  ;;  %v1484_v53 = vmul.f32 0.01, %v1452_v37 }
 0x26f   :  { %v1343_v42 = vpop.f32.mrf.mxu1 }
 0x270   :  { %v1483_v5 = vmul.f32 0.01, %v1451_v52  ;;  %v1454_v50 = vadd.f32 %v3680_v6, %v1349_v63  ;;  %v1344_v9 = vadd.f32 %v1343_v42, %v3643_v56  ;;  %2390 = vmatprep.mubr.msk.f32.mxu1 %vm1550_vm11, %v1513_v25  ;;  %v1516_v35 = vmax.f32 %v1452_v37, %v1484_v53 }
 0x271   :  { %v2337_v26 = vpop.f32.mrf.mxu1  ;;  %2391 = vmatmul.mubr.msk.f32.gmra.mxu1 %vm1550_vm11, %v1514_v49 }
 0x272   :  { %v1515_v58 = vmax.f32 %v1451_v52, %v1483_v5  ;;  %v1453_v43 = vadd.f32 %v3680_v6, %v1344_v9  ;;  %v1359_v11 = vadd.f32 %v2337_v26, %v3645_v57  ;;  %v1486_v60 = vmul.f32 0.01, %v1454_v50 }
 0x273   :  { %v1353_v31 = vpop.f32.mrf.mxu1 }
 0x274   :  { %v1485_v15 = vmul.f32 0.01, %v1453_v43  ;;  %v1456_v29 = vadd.f32 %v3680_v6, %v1359_v11  ;;  %v1354_v30 = vadd.f32 %v1353_v31, %v3647_v55  ;;  %2393 = vmatprep.mubr.msk.f32.mxu1 %vm1550_vm11, %v1515_v58  ;;  %v1518_v23 = vmax.f32 %v1454_v50, %v1486_v60 }
 0x275   :  { %v2340_v56 = vpop.f32.mrf.mxu1  ;;  %2394 = vmatmul.mubr.msk.f32.gmra.mxu1 %vm1550_vm11, %v1516_v35 }
 0x276   :  { %v1517_v61 = vmax.f32 %v1453_v43, %v1485_v15  ;;  %v1455_v51 = vadd.f32 %v3680_v6, %v1354_v30  ;;  %v1369_v1 = vadd.f32 %v2340_v56, %v3649_v7  ;;  %v1488_v57 = vmul.f32 0.01, %v1456_v29 }
 0x277   :  { %v1363_v12 = vpop.f32.mrf.mxu1 }
 0x278   :  { %v1487_v38 = vmul.f32 0.01, %v1455_v51  ;;  %v1458_v24 = vadd.f32 %v3680_v6, %v1369_v1  ;;  %v1364_v3 = vadd.f32 %v1363_v12, %v3651_v27  ;;  %2396 = vmatprep.mubr.msk.f32.mxu1 %vm1550_vm11, %v1517_v61  ;;  %v1520_v17 = vmax.f32 %v1456_v29, %v1488_v57 }
 0x279   :  { %v2343_v55 = vpop.f32.mrf.mxu1  ;;  %2397 = vmatmul.mubr.msk.f32.gmra.mxu1 %vm1550_vm11, %v1518_v23 }
 0x27a   :  { %v1519_v62 = vmax.f32 %v1455_v51, %v1487_v38  ;;  %v1457_v54 = vadd.f32 %v3680_v6, %v1364_v3  ;;  %v1379_v18 = vadd.f32 %v2343_v55, %v3653_v13  ;;  %v1490_v7 = vmul.f32 0.01, %v1458_v24 }
 0x27b   :  { %v1373_v47 = vpop.f32.mrf.mxu1 }
 0x27c   :  { %v1489_v14 = vmul.f32 0.01, %v1457_v54  ;;  %v1460_v10 = vadd.f32 %v3680_v6, %v1379_v18  ;;  %v1374_v34 = vadd.f32 %v1373_v47, %v3655_v19  ;;  %2399 = vmatprep.mubr.msk.f32.mxu1 %vm1550_vm11, %v1519_v62  ;;  %v1522_v28 = vmax.f32 %v1458_v24, %v1490_v7 }
 0x27d   :  { %v2346_v27 = vpop.f32.mrf.mxu1  ;;  %2400 = vmatmul.mubr.msk.f32.gmra.mxu1 %vm1550_vm11, %v1520_v17 }
 0x27e   :  { %v1521_v21 = vmax.f32 %v1457_v54, %v1489_v14  ;;  %v1459_v48 = vadd.f32 %v3680_v6, %v1374_v34  ;;  %v1389_v40 = vadd.f32 %v2346_v27, %v3657_v20  ;;  %v1492_v13 = vmul.f32 0.01, %v1460_v10 }
 0x27f   :  { %v1383_v44 = vpop.f32.mrf.mxu1 }
 0x280   :  { %v1491_v22 = vmul.f32 0.01, %v1459_v48  ;;  %v1462_v16 = vadd.f32 %v3680_v6, %v1389_v40  ;;  %v1384_v4 = vadd.f32 %v1383_v44, %v3659_v0  ;;  %2402 = vmatprep.mubr.msk.f32.mxu1 %vm1550_vm11, %v1521_v21  ;;  %v1524_v25 = vmax.f32 %v1460_v10, %v1492_v13 }
 0x281   :  { %v2349_v19 = vpop.f32.mrf.mxu1  ;;  %2403 = vmatmul.mubr.msk.f32.gmra.mxu1 %vm1550_vm11, %v1522_v28 }
 0x282   :  { %v1523_v37 = vmax.f32 %v1459_v48, %v1491_v22  ;;  %v1461_v41 = vadd.f32 %v3680_v6, %v1384_v4  ;;  %v1399_v2 = vadd.f32 %v2349_v19, %v3661_v36  ;;  %v1494_v20 = vmul.f32 0.01, %v1462_v16 }
 0x283   :  { %v1393_v52 = vpop.f32.mrf.mxu1 }
 0x284   :  { %v1493_v63 = vmul.f32 0.01, %v1461_v41  ;;  %v1464_v49 = vadd.f32 %v3680_v6, %v1399_v2  ;;  %v1394_v53 = vadd.f32 %v1393_v52, %v3663_v33  ;;  %2405 = vmatprep.mubr.msk.f32.mxu1 %vm1550_vm11, %v1523_v37  ;;  %v1526_v9 = vmax.f32 %v1462_v16, %v1494_v20 }
 0x285   :  { %v2352_v0 = vpop.f32.mrf.mxu1  ;;  %2406 = vmatmul.mubr.msk.f32.gmra.mxu1 %vm1550_vm11, %v1524_v25 }
 0x286   :  { %v1525_v42 = vmax.f32 %v1461_v41, %v1493_v63  ;;  %v1463_v5 = vadd.f32 %v3680_v6, %v1394_v53  ;;  %v1409_v50 = vadd.f32 %v2352_v0, %v3665_v39  ;;  %v1496_v36 = vmul.f32 0.01, %v1464_v49 }
 0x287   :  { %v1403_v26 = vpop.f32.mrf.mxu1 }
 0x288   :  { %v1495_v58 = vmul.f32 0.01, %v1463_v5  ;;  %v1466_v43 = vadd.f32 %v3680_v6, %v1409_v50  ;;  %v1404_v11 = vadd.f32 %v1403_v26, %v3667_v45  ;;  %2408 = vmatprep.mubr.msk.f32.mxu1 %vm1550_vm11, %v1525_v42  ;;  %v1528_v15 = vmax.f32 %v1464_v49, %v1496_v36 }
 0x289   :  { %v2355_v33 = vpop.f32.mrf.mxu1  ;;  %2409 = vmatmul.mubr.msk.f32.gmra.mxu1 %vm1550_vm11, %v1526_v9 }
 0x28a   :  { %v1527_v35 = vmax.f32 %v1463_v5, %v1495_v58  ;;  %v1465_v60 = vadd.f32 %v3680_v6, %v1404_v11  ;;  %v1419_v31 = vadd.f32 %v2355_v33, %v3669_v46  ;;  %v1498_v39 = vmul.f32 0.01, %v1466_v43 }
 0x28b   :  { %v1413_v29 = vpop.f32.mrf.mxu1 }
 0x28c   :  { %v1497_v30 = vmul.f32 0.01, %v1465_v60  ;;  %v1468_v56 = vadd.f32 %v3680_v6, %v1419_v31  ;;  %v1414_v61 = vadd.f32 %v1413_v29, %v3671_v32  ;;  %2411 = vmatprep.mubr.msk.f32.mxu1 %vm1550_vm11, %v1527_v35  ;;  %v1530_v57 = vmax.f32 %v1466_v43, %v1498_v39 }
 0x28d   :  { %v2358_v45 = vpop.f32.mrf.mxu1  ;;  %2412 = vmatmul.mubr.msk.f32.gmra.mxu1 %vm1550_vm11, %v1528_v15 }
 0x28e   :  { %v1529_v51 = vmax.f32 %v1465_v60, %v1497_v30  ;;  %v1467_v1 = vadd.f32 %v3680_v6, %v1414_v61  ;;  %v1429_v23 = vadd.f32 %v2358_v45, %v3673_v59  ;;  %v1500_v46 = vmul.f32 0.01, %v1468_v56 }
 0x28f   :  { %v1423_v12 = vpop.f32.mrf.mxu1 }
 0x290   :  { %v1499_v38 = vmul.f32 0.01, %v1467_v1  ;;  %v1470_v24 = vadd.f32 %v3680_v6, %v1429_v23  ;;  %v1424_v3 = vadd.f32 %v1423_v12, %v3675_v8  ;;  %2414 = vmatprep.mubr.msk.f32.mxu1 %vm1550_vm11, %v1529_v51  ;;  %v1532_v62 = vmax.f32 %v1468_v56, %v1500_v46  ;;  %v3774_v8 = vld [vmem:[%s3942_s6] ss:$0 sm:$0xff] }
 0x291   :  { %2415 = vmatmul.mubr.msk.f32.gmra.mxu1 %vm1550_vm11, %v1530_v57 }
 0x292   :  { %v1531_v32 = vmax.f32 %v1467_v1, %v1499_v38  ;;  %v1469_v55 = vadd.f32 %v3680_v6, %v1424_v3  ;;  %v1502_v54 = vmul.f32 0.01, %v1470_v24 }
 0x294   :  { %v1501_v18 = vmul.f32 0.01, %v1469_v55  ;;  %2417 = vmatprep.mubr.msk.f32.mxu1 %vm1550_vm11, %v1531_v32  ;;  %v1534_v17 = vmax.f32 %v1470_v24, %v1502_v54 }
 0x295   :  { %2418 = vmatmul.mubr.msk.f32.gmra.mxu1 %vm1550_vm11, %v1532_v62 }
 0x296   :  { %v1533_v59 = vmax.f32 %v1469_v55, %v1501_v18 }
 0x298   :  { %2420 = vmatprep.mubr.msk.f32.mxu1 %vm1550_vm11, %v1533_v59 }
 0x299   :  { %2421 = vmatmul.mubr.msk.f32.gmra.mxu1 %vm1550_vm11, %v1534_v17 }
 0x31d   :  { %v2377_v7 = vpop.f32.mrf.mxu1 }
 0x31e   :  { %v1719_v6 = vadd.f32 %v2377_v7, %v3774_v8 }
 0x31f   :  { %v1713_v47 = vpop.f32.mrf.mxu1 }
 0x320   :  { %v1873_v14 = vmul.f32 0.01, %v1719_v6  ;;  %v1714_v10 = vadd.f32 %v3774_v8, %v1713_v47 }
 0x321   :  { %v2380_v34 = vpop.f32.mrf.mxu1 }
 0x322   :  { %v1905_v27 = vmax.f32 %v1719_v6, %v1873_v14  ;;  %v1872_v21 = vmul.f32 0.01, %v1714_v10  ;;  %v1729_v48 = vadd.f32 %v2380_v34, %v3774_v8 }
 0x323   :  { %v1723_v40 = vpop.f32.mrf.mxu1 }
 0x324   :  { %1937 = vst.msk [vmem:[%s3943_s7 + $0x8] sm:$0xff] %vm789_vm13, %v1905_v27  ;;  %v1904_v28 = vmax.f32 %v1714_v10, %v1872_v21  ;;  %v1875_v13 = vmul.f32 0.01, %v1729_v48  ;;  %v1724_v44 = vadd.f32 %v3774_v8, %v1723_v40 }
 0x325   :  { %v2383_v22 = vpop.f32.mrf.mxu1 }
 0x326   :  { %1936 = vst.msk [vmem:[%s3943_s7] sm:$0xff] %vm789_vm13, %v1904_v28  ;;  %v1907_v16 = vmax.f32 %v1729_v48, %v1875_v13  ;;  %v1874_v4 = vmul.f32 0.01, %v1724_v44  ;;  %v1739_v19 = vadd.f32 %v2383_v22, %v3774_v8 }
 0x327   :  { %v1733_v37 = vpop.f32.mrf.mxu1 }
 0x328   :  { %1939 = vst.msk [vmem:[%s3943_s7 + $0x18] sm:$0xff] %vm789_vm13, %v1907_v16  ;;  %v1906_v41 = vmax.f32 %v1724_v44, %v1874_v4  ;;  %v1877_v2 = vmul.f32 0.01, %v1739_v19  ;;  %v1734_v25 = vadd.f32 %v3774_v8, %v1733_v37 }
 0x329   :  { %v2386_v20 = vpop.f32.mrf.mxu1 }
 0x32a   :  { %1938 = vst.msk [vmem:[%s3943_s7 + $0x10] sm:$0xff] %vm789_vm13, %v1906_v41  ;;  %v1909_v52 = vmax.f32 %v1739_v19, %v1877_v2  ;;  %v1876_v63 = vmul.f32 0.01, %v1734_v25  ;;  %v1749_v49 = vadd.f32 %v2386_v20, %v3774_v8 }
 0x32b   :  { %v1743_v53 = vpop.f32.mrf.mxu1 }
 0x32c   :  { %1941 = vst.msk [vmem:[%s3943_s7 + $0x28] sm:$0xff] %vm789_vm13, %v1909_v52  ;;  %v1908_v0 = vmax.f32 %v1734_v25, %v1876_v63  ;;  %v1879_v42 = vmul.f32 0.01, %v1749_v49  ;;  %v1744_v5 = vadd.f32 %v3774_v8, %v1743_v53 }
 0x32d   :  { %v2389_v50 = vpop.f32.mrf.mxu1 }
 0x32e   :  { %1940 = vst.msk [vmem:[%s3943_s7 + $0x20] sm:$0xff] %vm789_vm13, %v1908_v0  ;;  %v1911_v9 = vmax.f32 %v1749_v49, %v1879_v42  ;;  %v1878_v36 = vmul.f32 0.01, %v1744_v5  ;;  %v1759_v26 = vadd.f32 %v2389_v50, %v3774_v8 }
 0x32f   :  { %v1753_v58 = vpop.f32.mrf.mxu1 }
 0x330   :  { %1943 = vst.msk [vmem:[%s3943_s7 + $0x38] sm:$0xff] %vm789_vm13, %v1911_v9  ;;  %v1910_v43 = vmax.f32 %v1744_v5, %v1878_v36  ;;  %v1881_v11 = vmul.f32 0.01, %v1759_v26  ;;  %v1754_v33 = vadd.f32 %v3774_v8, %v1753_v58 }
 0x331   :  { %v2392_v35 = vpop.f32.mrf.mxu1 }
 0x332   :  { %1942 = vst.msk [vmem:[%s3943_s7 + $0x30] sm:$0xff] %vm789_vm13, %v1910_v43  ;;  %v1913_v60 = vmax.f32 %v1759_v26, %v1881_v11  ;;  %v1880_v31 = vmul.f32 0.01, %v1754_v33  ;;  %v1769_v15 = vadd.f32 %v2392_v35, %v3774_v8 }
 0x333   :  { %v1763_v39 = vpop.f32.mrf.mxu1 }
 0x334   :  { %1945 = vst.msk [vmem:[%s3943_s7 + $0x48] sm:$0xff] %vm789_vm13, %v1913_v60  ;;  %v1912_v29 = vmax.f32 %v1754_v33, %v1880_v31  ;;  %v1883_v30 = vmul.f32 0.01, %v1769_v15  ;;  %v1764_v56 = vadd.f32 %v3774_v8, %v1763_v39 }
 0x335   :  { %v2395_v61 = vpop.f32.mrf.mxu1 }
 0x336   :  { %1944 = vst.msk [vmem:[%s3943_s7 + $0x40] sm:$0xff] %vm789_vm13, %v1912_v29  ;;  %v1915_v45 = vmax.f32 %v1769_v15, %v1883_v30  ;;  %v1882_v51 = vmul.f32 0.01, %v1764_v56  ;;  %v1779_v1 = vadd.f32 %v2395_v61, %v3774_v8 }
 0x337   :  { %v1773_v23 = vpop.f32.mrf.mxu1 }
 0x338   :  { %1947 = vst.msk [vmem:[%s3943_s7 + $0x58] sm:$0xff] %vm789_vm13, %v1915_v45  ;;  %v1914_v57 = vmax.f32 %v1764_v56, %v1882_v51  ;;  %v1885_v46 = vmul.f32 0.01, %v1779_v1  ;;  %v1774_v12 = vadd.f32 %v3774_v8, %v1773_v23 }
 0x339   :  { %v2398_v38 = vpop.f32.mrf.mxu1 }
 0x33a   :  { %1946 = vst.msk [vmem:[%s3943_s7 + $0x50] sm:$0xff] %vm789_vm13, %v1914_v57  ;;  %v1917_v24 = vmax.f32 %v1779_v1, %v1885_v46  ;;  %v1884_v3 = vmul.f32 0.01, %v1774_v12  ;;  %v1789_v32 = vadd.f32 %v2398_v38, %v3774_v8 }
 0x33b   :  { %v1783_v55 = vpop.f32.mrf.mxu1 }
 0x33c   :  { %1949 = vst.msk [vmem:[%s3943_s7 + $0x68] sm:$0xff] %vm789_vm13, %v1917_v24  ;;  %v1916_v62 = vmax.f32 %v1774_v12, %v1884_v3  ;;  %v1887_v54 = vmul.f32 0.01, %v1789_v32  ;;  %v1784_v18 = vadd.f32 %v3774_v8, %v1783_v55 }
 0x33d   :  { %v2401_v59 = vpop.f32.mrf.mxu1 }
 0x33e   :  { %1948 = vst.msk [vmem:[%s3943_s7 + $0x60] sm:$0xff] %vm789_vm13, %v1916_v62  ;;  %v1919_v17 = vmax.f32 %v1789_v32, %v1887_v54  ;;  %v1886_v7 = vmul.f32 0.01, %v1784_v18  ;;  %v1799_v6 = vadd.f32 %v2401_v59, %v3774_v8 }
 0x33f   :  { %v1793_v47 = vpop.f32.mrf.mxu1 }
 0x340   :  { %1951 = vst.msk [vmem:[%s3943_s7 + $0x78] sm:$0xff] %vm789_vm13, %v1919_v17  ;;  %v1918_v14 = vmax.f32 %v1784_v18, %v1886_v7  ;;  %v1889_v10 = vmul.f32 0.01, %v1799_v6  ;;  %v1794_v34 = vadd.f32 %v3774_v8, %v1793_v47 }
 0x341   :  { %v2404_v27 = vpop.f32.mrf.mxu1 }
 0x342   :  { %1950 = vst.msk [vmem:[%s3943_s7 + $0x70] sm:$0xff] %vm789_vm13, %v1918_v14  ;;  %v1921_v21 = vmax.f32 %v1799_v6, %v1889_v10  ;;  %v1888_v48 = vmul.f32 0.01, %v1794_v34  ;;  %v1809_v40 = vadd.f32 %v2404_v27, %v3774_v8 }
 0x343   :  { %v1803_v28 = vpop.f32.mrf.mxu1 }
 0x344   :  { %1953 = vst.msk [vmem:[%s3943_s7 + $0x88] sm:$0xff] %vm789_vm13, %v1921_v21  ;;  %v1920_v13 = vmax.f32 %v1794_v34, %v1888_v48  ;;  %v1891_v44 = vmul.f32 0.01, %v1809_v40  ;;  %v1804_v22 = vadd.f32 %v3774_v8, %v1803_v28 }
 0x345   :  { %v2407_v16 = vpop.f32.mrf.mxu1 }
 0x346   :  { %1952 = vst.msk [vmem:[%s3943_s7 + $0x80] sm:$0xff] %vm789_vm13, %v1920_v13  ;;  %v1923_v4 = vmax.f32 %v1809_v40, %v1891_v44  ;;  %v1890_v19 = vmul.f32 0.01, %v1804_v22  ;;  %v1819_v37 = vadd.f32 %v2407_v16, %v3774_v8 }
 0x347   :  { %v1813_v41 = vpop.f32.mrf.mxu1 }
 0x348   :  { %1955 = vst.msk [vmem:[%s3943_s7 + $0x98] sm:$0xff] %vm789_vm13, %v1923_v4  ;;  %v1922_v2 = vmax.f32 %v1804_v22, %v1890_v19  ;;  %v1893_v25 = vmul.f32 0.01, %v1819_v37  ;;  %v1814_v20 = vadd.f32 %v3774_v8, %v1813_v41 }
 0x349   :  { %v2410_v52 = vpop.f32.mrf.mxu1 }
 0x34a   :  { %1954 = vst.msk [vmem:[%s3943_s7 + $0x90] sm:$0xff] %vm789_vm13, %v1922_v2  ;;  %v1925_v63 = vmax.f32 %v1819_v37, %v1893_v25  ;;  %v1892_v49 = vmul.f32 0.01, %v1814_v20  ;;  %v1829_v53 = vadd.f32 %v2410_v52, %v3774_v8 }
 0x34b   :  { %v1823_v0 = vpop.f32.mrf.mxu1 }
 0x34c   :  { %1957 = vst.msk [vmem:[%s3943_s7 + $0xa8] sm:$0xff] %vm789_vm13, %v1925_v63  ;;  %v1924_v42 = vmax.f32 %v1814_v20, %v1892_v49  ;;  %v1895_v5 = vmul.f32 0.01, %v1829_v53  ;;  %v1824_v50 = vadd.f32 %v3774_v8, %v1823_v0 }
 0x34d   :  { %v2413_v9 = vpop.f32.mrf.mxu1 }
 0x34e   :  { %1956 = vst.msk [vmem:[%s3943_s7 + $0xa0] sm:$0xff] %vm789_vm13, %v1924_v42  ;;  %v1927_v36 = vmax.f32 %v1829_v53, %v1895_v5  ;;  %v1894_v26 = vmul.f32 0.01, %v1824_v50  ;;  %v1839_v58 = vadd.f32 %v2413_v9, %v3774_v8 }
 0x34f   :  { %v1833_v43 = vpop.f32.mrf.mxu1 }
 0x350   :  { %1959 = vst.msk [vmem:[%s3943_s7 + $0xb8] sm:$0xff] %vm789_vm13, %v1927_v36  ;;  %v1926_v11 = vmax.f32 %v1824_v50, %v1894_v26  ;;  %v1897_v33 = vmul.f32 0.01, %v1839_v58  ;;  %v1834_v35 = vadd.f32 %v3774_v8, %v1833_v43 }
 0x351   :  { %v2416_v60 = vpop.f32.mrf.mxu1 }
 0x352   :  { %1958 = vst.msk [vmem:[%s3943_s7 + $0xb0] sm:$0xff] %vm789_vm13, %v1926_v11  ;;  %v1929_v31 = vmax.f32 %v1839_v58, %v1897_v33  ;;  %v1896_v15 = vmul.f32 0.01, %v1834_v35  ;;  %v1849_v39 = vadd.f32 %v2416_v60, %v3774_v8 }
 0x353   :  { %v1843_v29 = vpop.f32.mrf.mxu1 }
 0x354   :  { %1961 = vst.msk [vmem:[%s3943_s7 + $0xc8] sm:$0xff] %vm789_vm13, %v1929_v31  ;;  %v1928_v30 = vmax.f32 %v1834_v35, %v1896_v15  ;;  %v1899_v56 = vmul.f32 0.01, %v1849_v39  ;;  %v1844_v61 = vadd.f32 %v3774_v8, %v1843_v29 }
 0x355   :  { %v2419_v45 = vpop.f32.mrf.mxu1 }
 0x356   :  { %1960 = vst.msk [vmem:[%s3943_s7 + $0xc0] sm:$0xff] %vm789_vm13, %v1928_v30  ;;  %v1931_v51 = vmax.f32 %v1849_v39, %v1899_v56  ;;  %v1898_v1 = vmul.f32 0.01, %v1844_v61  ;;  %v1859_v23 = vadd.f32 %v2419_v45, %v3774_v8 }
 0x357   :  { %v1853_v57 = vpop.f32.mrf.mxu1 }
 0x358   :  { %1963 = vst.msk [vmem:[%s3943_s7 + $0xd8] sm:$0xff] %vm789_vm13, %v1931_v51  ;;  %v1930_v46 = vmax.f32 %v1844_v61, %v1898_v1  ;;  %v1901_v12 = vmul.f32 0.01, %v1859_v23  ;;  %v1854_v38 = vadd.f32 %v3774_v8, %v1853_v57 }
 0x359   :  { %v2422_v24 = vpop.f32.mrf.mxu1 }
 0x35a   :  { %1962 = vst.msk [vmem:[%s3943_s7 + $0xd0] sm:$0xff] %vm789_vm13, %v1930_v46  ;;  %v1933_v3 = vmax.f32 %v1859_v23, %v1901_v12  ;;  %v1900_v32 = vmul.f32 0.01, %v1854_v38  ;;  %v1869_v55 = vadd.f32 %v2422_v24, %v3774_v8 }
 0x35b   :  { %v1863_v62 = vpop.f32.mrf.mxu1 }
 0x35c   :  { %1965 = vst.msk [vmem:[%s3943_s7 + $0xe8] sm:$0xff] %vm789_vm13, %v1933_v3  ;;  %v1932_v54 = vmax.f32 %v1854_v38, %v1900_v32  ;;  %v1903_v18 = vmul.f32 0.01, %v1869_v55  ;;  %v1864_v59 = vadd.f32 %v3774_v8, %v1863_v62 }
 0x35e   :  { %1964 = vst.msk [vmem:[%s3943_s7 + $0xe0] sm:$0xff] %vm789_vm13, %v1932_v54  ;;  %v1935_v17 = vmax.f32 %v1869_v55, %v1903_v18  ;;  %v1902_v7 = vmul.f32 0.01, %v1864_v59 }
 0x360   :  { %1967 = vst.msk [vmem:[%s3943_s7 + $0xf8] sm:$0xff] %vm789_vm13, %v1935_v17  ;;  %v1934_v6 = vmax.f32 %v1864_v59, %v1902_v7 }
 0x362   :  { %1966 = vst.msk [vmem:[%s3943_s7 + $0xf0] sm:$0xff] %vm789_vm13, %v1934_v6 }
 0x363   :  { %1972 = vsyncpa [#allocation3], 1 }

</bundles_post_ra>
